<compile_context>
chip_gen: v7x
topology: tpu7x:2x2x1
jax: 0.10.0
libtpu: 0.0.40
codegen_flags: <defaults>
</compile_context>

<pallas_src>
import functools

import jax
import jax.numpy as jnp
from jax import lax
from jax.experimental import pallas as pl
from jax.experimental.pallas import tpu as pltpu

BN_EPS = 1e-5

# 2048 sublane-rows * 128 lanes = 256K spatial elements per tile.
# x-tile = Cin*TS*128*4 B (4 MiB @ Cin=4), out-tile = Cout*TS*128*4 B (3 MiB @ Cout=3);
# double-buffered in+out <= ~15 MiB -> fits every generation (v7x: 64 MiB physical VMEM).
_TS_CAP = 2048
_VMEM_LIMIT = 40 * 1024 * 1024  # headroom for compiler temps; < v7x physical VMEM


def _cdiv(a, b):
    return -(-a // b)


def _choose_rows_tile(r, cap=_TS_CAP):
    """r = number of 128-lane rows (= ceil(HW/128)).

    Returns (ts, rp): sublane rows per tile and padded total rows, such that
    ts divides rp and the (ts, 128) block is legal (ts % 8 == 0 or ts == rp)."""
    if r <= cap:
        return r, r                      # single spatial tile; block == full dim is legal
    ntiles = _cdiv(r, cap)
    ts = _cdiv(r, ntiles)
    ts = _cdiv(ts, 8) * 8                # sublane block dim must be a multiple of 8
    return ts, ntiles * ts


def _stats_kernel(x_ref, w_ref, stats_ref, *, cin, cout, ts, hw, mask_tail):
    """Accumulate per-channel [sum, sumsq, min, max] of the (bias-free) conv output.

    x_ref: (Cin, TS, 128) VMEM tile.  w_ref: (Cout, Cin) in SMEM.
    stats_ref: (Cout, 4) per-batch partial accumulator (VMEM-resident across the
    spatial grid axis)."""
    @pl.when(pl.program_id(1) == 0)
    def _init():
        stats_ref[:, 0:2] = jnp.zeros((cout, 2), jnp.float32)
        stats_ref[:, 2:3] = jnp.full((cout, 1), jnp.inf, jnp.float32)
        stats_ref[:, 3:4] = jnp.full((cout, 1), -jnp.inf, jnp.float32)

    x = x_ref[...].astype(jnp.float32)                       # (Cin, TS, 128)

    if mask_tail:                                            # static (trace-time) branch
        row = lax.broadcasted_iota(jnp.int32, (ts, 128), 0)
        col = lax.broadcasted_iota(jnp.int32, (ts, 128), 1)
        idx = (pl.program_id(1) * ts + row) * 128 + col
        valid = idx < hw
    else:
        valid = None

    for o in range(cout):
        # 1x1 conv channel o as Cin scalar-splat FMAs on the VPU (K=4/M=3 is far
        # too small for the MXU; the kernel is HBM-bound anyway).
        y = w_ref[o, 0] * x[0]
        for c in range(1, cin):
            y = y + w_ref[o, c] * x[c]
        if valid is not None:
            y_s = jnp.where(valid, y, 0.0)
            y_mn = jnp.where(valid, y, jnp.inf)
            y_mx = jnp.where(valid, y, -jnp.inf)
        else:
            y_s = y_mn = y_mx = y
        stats_ref[o:o + 1, 0:1] += jnp.sum(y_s).reshape(1, 1)
        stats_ref[o:o + 1, 1:2] += jnp.sum(y_s * y_s).reshape(1, 1)
        stats_ref[o:o + 1, 2:3] = jnp.minimum(stats_ref[o:o + 1, 2:3],
                                              jnp.min(y_mn).reshape(1, 1))
        stats_ref[o:o + 1, 3:4] = jnp.maximum(stats_ref[o:o + 1, 3:4],
                                              jnp.max(y_mx).reshape(1, 1))


def _apply_kernel(x_ref, w_ref, par_ref, o_ref, *, cin, cout):
    """Recompute conv (BN scale pre-folded into w) and apply the fused epilogue.

    par_ref (SMEM, (Cout, 4)): [shift, 1/range, alpha/range, -gmin/range]."""
    x = x_ref[...].astype(jnp.float32)                       # (Cin, TS, 128)
    for o in range(cout):
        z = w_ref[o, 0] * x[0]
        for c in range(1, cin):
            z = z + w_ref[o, c] * x[c]
        z = z + par_ref[o, 0]                                # BN shift
        sel = jnp.where(z >= 0.0, par_ref[o, 1], par_ref[o, 2])
        o_ref[o] = (z * sel + par_ref[o, 3]).astype(o_ref.dtype)


@jax.jit
def out_conv_forward(x_nchw, conv_w, conv_b, bn_gamma, bn_beta, prelu_alpha):
    """x_nchw: (N, Cin, H, W). conv_w: (Cout, Cin, 1, 1). Returns (N, Cout, H, W)."""
    del conv_b  # cancels exactly against the training-mode BatchNorm mean subtraction
    N, Cin, H, W = x_nchw.shape
    Cout = conv_w.shape[0]
    HW = H * W

    R = _cdiv(HW, 128)                     # 128-lane rows
    TS, Rp = _choose_rows_tile(R)
    HWp = Rp * 128
    mask_tail = HWp != HW
    grid = (N, Rp // TS)

    x3 = x_nchw.reshape(N, Cin, HW)                          # channel-major: no transpose
    if mask_tail:
        x3 = jnp.pad(x3, ((0, 0), (0, 0), (0, HWp - HW)))
    x4 = x3.reshape(N, Cin, Rp, 128)                         # spatial -> (sublane, lane)
    w2d = conv_w.reshape(Cout, Cin).astype(jnp.float32)

    smem_spec = pl.BlockSpec(memory_space=pltpu.MemorySpace.SMEM)
    x_spec = pl.BlockSpec((None, Cin, TS, 128), lambda n, t: (n, 0, t, 0))

    # ---- pass 1: per-batch partial stats of the conv output ---------------------------
    stats = pl.pallas_call(
        functools.partial(_stats_kernel, cin=Cin, cout=Cout, ts=TS, hw=HW,
                          mask_tail=mask_tail),
        out_shape=jax.ShapeDtypeStruct((N, Cout, 4), jnp.float32),
        grid=grid,
        in_specs=[x_spec, smem_spec],
        out_specs=pl.BlockSpec((None, Cout, 4), lambda n, t: (n, 0, 0)),
        compiler_params=pltpu.CompilerParams(
            dimension_semantics=("parallel", "arbitrary"),   # batch axis -> v7x megacore
            vmem_limit_bytes=_VMEM_LIMIT,
        ),
    )(x4, w2d)

    ysum = jnp.sum(stats[:, :, 0], axis=0)
    ysq = jnp.sum(stats[:, :, 1], axis=0)
    ymin = jnp.min(stats[:, :, 2], axis=0)
    ymax = jnp.max(stats[:, :, 3], axis=0)

    count = jnp.float32(N * HW)
    mean = ysum / count
    # TODO(synk): E[y^2]-E[y]^2 in f32 can cancel when |mean| >> std over very large
    # N*H*W; switch to shifted / Welford-style partial accumulation in that regime.
    var = jnp.maximum(ysq / count - mean * mean, 0.0)
    scale = bn_gamma.astype(jnp.float32) * lax.rsqrt(var + BN_EPS)
    shift = bn_beta.astype(jnp.float32) - mean * scale

    # Global min/max of PReLU(scale*y + shift) derived analytically from the per-channel
    # pre-BN extremes (handles either sign of `scale`; exact for alpha >= 0, the PyTorch
    # PReLU default of 0.25).
    # TODO(synk): a learned alpha < 0 makes PReLU non-monotone; that case needs an explicit
    # second min/max reduction pass instead of this shortcut.
    alpha = jnp.broadcast_to(prelu_alpha.astype(jnp.float32).reshape(-1), scale.shape)
    z_a = scale * ymin + shift
    z_b = scale * ymax + shift
    lo = jnp.minimum(z_a, z_b)
    hi = jnp.maximum(z_a, z_b)
    p_lo = jnp.where(lo >= 0.0, lo, alpha * lo)
    p_hi = jnp.where(hi >= 0.0, hi, alpha * hi)
    gmin = jnp.min(jnp.minimum(p_lo, p_hi))
    gmax = jnp.max(jnp.maximum(p_lo, p_hi))
    inv_range = 1.0 / (gmax - gmin)        # NaN/inf if the tensor is constant (as PyTorch)
    oshift = -gmin * inv_range

    w_scaled = (w2d * scale[:, None]).astype(jnp.float32)    # BN scale folded into conv w
    params = jnp.stack(
        [shift,
         jnp.broadcast_to(inv_range, shift.shape),
         alpha * inv_range,
         jnp.broadcast_to(oshift, shift.shape)],
        axis=1).astype(jnp.float32)                          # (Cout, 4) -> SMEM

    # ---- pass 2: fused conv + BN + PReLU + normalize, full-vreg lane-dense tiles -------
    out4 = pl.pallas_call(
        functools.partial(_apply_kernel, cin=Cin, cout=Cout),
        out_shape=jax.ShapeDtypeStruct((N, Cout, Rp, 128), x_nchw.dtype),
        grid=grid,
        in_specs=[x_spec, smem_spec, smem_spec],
        out_specs=pl.BlockSpec((None, Cout, TS, 128), lambda n, t: (n, 0, t, 0)),
        compiler_params=pltpu.CompilerParams(
            dimension_semantics=("parallel", "parallel"),
            vmem_limit_bytes=_VMEM_LIMIT,
        ),
    )(x4, w_scaled, params)

    out3 = out4.reshape(N, Cout, HWp)
    if mask_tail:
        out3 = out3[:, :, :HW]
    return out3.reshape(N, Cout, H, W)


def _reference(x, conv_w, conv_b, bn_gamma, bn_beta, prelu_alpha):
    """Plain-JAX reference of the PyTorch module (training-mode BatchNorm)."""
    Cout, Cin = conv_w.shape[0], conv_w.shape[1]
    w = conv_w.reshape(Cout, Cin)
    y = jnp.einsum('oc,nchw->nohw', w, x) + conv_b.reshape(1, Cout, 1, 1)
    mean = jnp.mean(y, axis=(0, 2, 3), keepdims=True)
    var = jnp.mean((y - mean) ** 2, axis=(0, 2, 3), keepdims=True)
    y = (y - mean) * lax.rsqrt(var + BN_EPS)
    y = y * bn_gamma.reshape(1, Cout, 1, 1) + bn_beta.reshape(1, Cout, 1, 1)
    a = jnp.broadcast_to(prelu_alpha.reshape(-1), (Cout,)).reshape(1, Cout, 1, 1)
    y = jnp.where(y >= 0, y, a * y)
    return (y - y.min()) / (y.max() - y.min())


if __name__ == "__main__":
    key = jax.random.PRNGKey(0)
    k_x, k_w, k_b = jax.random.split(key, 3)

    N, Cin, H, W = 2, 4, 16, 16
    Cout = 3

    x = jax.random.normal(k_x, (N, Cin, H, W), dtype=jnp.float32)

    # Deterministic parameter init (shapes match nn.Conv2d/BatchNorm2d/PReLU defaults).
    conv_w = jax.random.normal(k_w, (Cout, Cin, 1, 1), dtype=jnp.float32) * 0.1
    conv_b = jax.random.normal(k_b, (Cout,), dtype=jnp.float32) * 0.1
    bn_gamma = jnp.ones((Cout,), dtype=jnp.float32)         # BatchNorm2d default weight
    bn_beta = jnp.zeros((Cout,), dtype=jnp.float32)         # BatchNorm2d default bias
    prelu_alpha = jnp.full((1,), 0.25, dtype=jnp.float32)   # PReLU default

    out = out_conv_forward(x, conv_w, conv_b, bn_gamma, bn_beta, prelu_alpha)
    jax.block_until_ready(out)
    assert out.shape == (N, Cout, H, W)
    assert bool(jnp.all(jnp.isfinite(out)))
    ref = _reference(x, conv_w, conv_b, bn_gamma, bn_beta, prelu_alpha)
    err = float(jnp.max(jnp.abs(out - ref)))
    assert err < 1e-3, f"max abs error vs reference: {err}"

    # Also exercise the non-128-divisible spatial path (padding + tail masking).
    x2 = jax.random.normal(k_x, (N, Cin, 10, 10), dtype=jnp.float32)
    out2 = out_conv_forward(x2, conv_w, conv_b, bn_gamma, bn_beta, prelu_alpha)
    jax.block_until_ready(out2)
    ref2 = _reference(x2, conv_w, conv_b, bn_gamma, bn_beta, prelu_alpha)
    err2 = float(jnp.max(jnp.abs(out2 - ref2)))
    assert err2 < 1e-3, f"max abs error vs reference (padded path): {err2}"

    print("KERNEL_OK")
</pallas_src>

<mosaic_0001>
module attributes {stable_mosaic.version = 11 : i64} {
  func.func @_stats_kernel(%arg0: i32, %arg1: i32, %arg2: memref<1x4x2x128xf32, #tpu.memory_space<vmem>>, %arg3: memref<3x4xf32, #tpu.memory_space<smem>>, %arg4: memref<1x3x4xf32, #tpu.memory_space<vmem>>) attributes {dimension_semantics = [#tpu.dimension_semantics<parallel>, #tpu.dimension_semantics<arbitrary>], iteration_bounds = array<i64: 2, 1>, scalar_prefetch = 0 : i64, scratch_operands = 0 : i64, tpu.core_type = #tpu.core_type<tc>, window_params = [{transform_indices = @transform_0, window_bounds = array<i64: 1, 4, 2, 128>}, {transform_indices = @transform_1, window_bounds = array<i64: 3, 4>}, {transform_indices = @transform_2, window_bounds = array<i64: 1, 3, 4>}]} {
    %c0_i32 = arith.constant 0 : i32
    %0 = arith.cmpi eq, %arg1, %c0_i32 : i32
    %1 = arith.extui %0 : i1 to i32
    %c0_i32_0 = arith.constant 0 : i32
    %2 = arith.cmpi ne, %1, %c0_i32_0 : i32
    scf.if %2 {
      %cst_108 = arith.constant 0.000000e+00 : f32
      %209 = vector.broadcast %cst_108 : f32 to vector<3x2xf32>
      %c0_109 = arith.constant 0 : index
      %c0_110 = arith.constant 0 : index
      %c0_111 = arith.constant 0 : index
      %210 = vector.load %arg4[%c0_109, %c0_110, %c0_111] : memref<1x3x4xf32, #tpu.memory_space<vmem>>, vector<1x3x2xf32>
      %211 = vector.shape_cast %210 : vector<1x3x2xf32> to vector<3x2xf32>
      %212 = vector.shape_cast %209 : vector<3x2xf32> to vector<1x3x2xf32>
      tpu.vector_store %arg4[%c0_109, %c0_110, %c0_111], %212 {strides = array<i32>} : memref<1x3x4xf32, #tpu.memory_space<vmem>>, vector<1x3x2xf32>,
      %cst_112 = arith.constant 0x7F800000 : f32
      %213 = vector.broadcast %cst_112 : f32 to vector<3x1xf32>
      %c0_113 = arith.constant 0 : index
      %c0_114 = arith.constant 0 : index
      %c2_115 = arith.constant 2 : index
      %214 = vector.load %arg4[%c0_113, %c0_114, %c2_115] : memref<1x3x4xf32, #tpu.memory_space<vmem>>, vector<1x3x1xf32>
      %215 = vector.shape_cast %214 : vector<1x3x1xf32> to vector<3x1xf32>
      %216 = vector.shape_cast %213 : vector<3x1xf32> to vector<1x3x1xf32>
      tpu.vector_store %arg4[%c0_113, %c0_114, %c2_115], %216 {strides = array<i32>} : memref<1x3x4xf32, #tpu.memory_space<vmem>>, vector<1x3x1xf32>,
      %cst_116 = arith.constant 0xFF800000 : f32
      %217 = vector.broadcast %cst_116 : f32 to vector<3x1xf32>
      %c0_117 = arith.constant 0 : index
      %c0_118 = arith.constant 0 : index
      %c3_119 = arith.constant 3 : index
      %218 = vector.load %arg4[%c0_117, %c0_118, %c3_119] : memref<1x3x4xf32, #tpu.memory_space<vmem>>, vector<1x3x1xf32>
      %219 = vector.shape_cast %218 : vector<1x3x1xf32> to vector<3x1xf32>
      %220 = vector.shape_cast %217 : vector<3x1xf32> to vector<1x3x1xf32>
      tpu.vector_store %arg4[%c0_117, %c0_118, %c3_119], %220 {strides = array<i32>} : memref<1x3x4xf32, #tpu.memory_space<vmem>>, vector<1x3x1xf32>,
    } else {
    }
    %c0 = arith.constant 0 : index
    %c0_1 = arith.constant 0 : index
    %c0_2 = arith.constant 0 : index
    %c0_3 = arith.constant 0 : index
    %3 = vector.load %arg2[%c0, %c0_1, %c0_2, %c0_3] : memref<1x4x2x128xf32, #tpu.memory_space<vmem>>, vector<1x4x2x128xf32>
    %4 = vector.shape_cast %3 : vector<1x4x2x128xf32> to vector<4x2x128xf32>
    %c0_4 = arith.constant 0 : index
    %c0_5 = arith.constant 0 : index
    %5 = memref.load %arg3[%c0_4, %c0_5] : memref<3x4xf32, #tpu.memory_space<smem>>
    %6 = vector.extract_strided_slice %4 {offsets = [0, 0, 0], sizes = [1, 2, 128], strides = [1, 1, 1]} : vector<4x2x128xf32> to vector<1x2x128xf32>
    %7 = vector.shape_cast %6 : vector<1x2x128xf32> to vector<2x128xf32>
    %8 = vector.broadcast %5 : f32 to vector<2x128xf32>
    %9 = arith.mulf %8, %7 : vector<2x128xf32>
    %c0_6 = arith.constant 0 : index
    %c1 = arith.constant 1 : index
    %10 = memref.load %arg3[%c0_6, %c1] : memref<3x4xf32, #tpu.memory_space<smem>>
    %11 = vector.extract_strided_slice %4 {offsets = [1, 0, 0], sizes = [1, 2, 128], strides = [1, 1, 1]} : vector<4x2x128xf32> to vector<1x2x128xf32>
    %12 = vector.shape_cast %11 : vector<1x2x128xf32> to vector<2x128xf32>
    %13 = vector.broadcast %10 : f32 to vector<2x128xf32>
    %14 = arith.mulf %13, %12 : vector<2x128xf32>
    %15 = arith.addf %9, %14 : vector<2x128xf32>
    %c0_7 = arith.constant 0 : index
    %c2 = arith.constant 2 : index
    %16 = memref.load %arg3[%c0_7, %c2] : memref<3x4xf32, #tpu.memory_space<smem>>
    %17 = vector.extract_strided_slice %4 {offsets = [2, 0, 0], sizes = [1, 2, 128], strides = [1, 1, 1]} : vector<4x2x128xf32> to vector<1x2x128xf32>
    %18 = vector.shape_cast %17 : vector<1x2x128xf32> to vector<2x128xf32>
    %19 = vector.broadcast %16 : f32 to vector<2x128xf32>
    %20 = arith.mulf %19, %18 : vector<2x128xf32>
    %21 = arith.addf %15, %20 : vector<2x128xf32>
    %c0_8 = arith.constant 0 : index
    %c3 = arith.constant 3 : index
    %22 = memref.load %arg3[%c0_8, %c3] : memref<3x4xf32, #tpu.memory_space<smem>>
    %23 = vector.extract_strided_slice %4 {offsets = [3, 0, 0], sizes = [1, 2, 128], strides = [1, 1, 1]} : vector<4x2x128xf32> to vector<1x2x128xf32>
    %24 = vector.shape_cast %23 : vector<1x2x128xf32> to vector<2x128xf32>
    %25 = vector.broadcast %22 : f32 to vector<2x128xf32>
    %26 = arith.mulf %25, %24 : vector<2x128xf32>
    %27 = arith.addf %21, %26 : vector<2x128xf32>
    %c0_9 = arith.constant 0 : index
    %c0_10 = arith.constant 0 : index
    %c0_11 = arith.constant 0 : index
    %28 = vector.load %arg4[%c0_9, %c0_10, %c0_11] : memref<1x3x4xf32, #tpu.memory_space<vmem>>, vector<1x1x1xf32>
    %29 = vector.shape_cast %28 : vector<1x1x1xf32> to vector<1x1xf32>
    %30 = vector.shape_cast %27 : vector<2x128xf32> to vector<1x2x128xf32>
    %cst = arith.constant dense<0.000000e+00> : vector<1xf32>
    %31 = vector.multi_reduction <add>, %30, %cst [1, 2] : vector<1x2x128xf32> to vector<1xf32>
    %32 = vector.shape_cast %31 : vector<1xf32> to vector<1x1x1xf32>
    %33 = vector.extract %32[0, 0, 0] : f32 from vector<1x1x1xf32>
    %34 = vector.broadcast %33 : f32 to vector<1x1xf32>
    %35 = arith.addf %29, %34 : vector<1x1xf32>
    %c0_12 = arith.constant 0 : index
    %c0_13 = arith.constant 0 : index
    %c0_14 = arith.constant 0 : index
    %36 = vector.load %arg4[%c0_12, %c0_13, %c0_14] : memref<1x3x4xf32, #tpu.memory_space<vmem>>, vector<1x1x1xf32>
    %37 = vector.shape_cast %36 : vector<1x1x1xf32> to vector<1x1xf32>
    %38 = vector.shape_cast %35 : vector<1x1xf32> to vector<1x1x1xf32>
    tpu.vector_store %arg4[%c0_12, %c0_13, %c0_14], %38 {strides = array<i32>} : memref<1x3x4xf32, #tpu.memory_space<vmem>>, vector<1x1x1xf32>,
    %c0_15 = arith.constant 0 : index
    %c0_16 = arith.constant 0 : index
    %c1_17 = arith.constant 1 : index
    %39 = vector.load %arg4[%c0_15, %c0_16, %c1_17] : memref<1x3x4xf32, #tpu.memory_space<vmem>>, vector<1x1x1xf32>
    %40 = vector.shape_cast %39 : vector<1x1x1xf32> to vector<1x1xf32>
    %41 = arith.mulf %27, %27 : vector<2x128xf32>
    %42 = vector.shape_cast %41 : vector<2x128xf32> to vector<1x2x128xf32>
    %cst_18 = arith.constant dense<0.000000e+00> : vector<1xf32>
    %43 = vector.multi_reduction <add>, %42, %cst_18 [1, 2] : vector<1x2x128xf32> to vector<1xf32>
    %44 = vector.shape_cast %43 : vector<1xf32> to vector<1x1x1xf32>
    %45 = vector.extract %44[0, 0, 0] : f32 from vector<1x1x1xf32>
    %46 = vector.broadcast %45 : f32 to vector<1x1xf32>
    %47 = arith.addf %40, %46 : vector<1x1xf32>
    %c0_19 = arith.constant 0 : index
    %c0_20 = arith.constant 0 : index
    %c1_21 = arith.constant 1 : index
    %48 = vector.load %arg4[%c0_19, %c0_20, %c1_21] : memref<1x3x4xf32, #tpu.memory_space<vmem>>, vector<1x1x1xf32>
    %49 = vector.shape_cast %48 : vector<1x1x1xf32> to vector<1x1xf32>
    %50 = vector.shape_cast %47 : vector<1x1xf32> to vector<1x1x1xf32>
    tpu.vector_store %arg4[%c0_19, %c0_20, %c1_21], %50 {strides = array<i32>} : memref<1x3x4xf32, #tpu.memory_space<vmem>>, vector<1x1x1xf32>,
    %c0_22 = arith.constant 0 : index
    %c0_23 = arith.constant 0 : index
    %c2_24 = arith.constant 2 : index
    %51 = vector.load %arg4[%c0_22, %c0_23, %c2_24] : memref<1x3x4xf32, #tpu.memory_space<vmem>>, vector<1x1x1xf32>
    %52 = vector.shape_cast %51 : vector<1x1x1xf32> to vector<1x1xf32>
    %53 = vector.shape_cast %27 : vector<2x128xf32> to vector<1x2x128xf32>
    %cst_25 = arith.constant dense<0x7F800000> : vector<1xf32>
    %54 = vector.multi_reduction <minimumf>, %53, %cst_25 [1, 2] : vector<1x2x128xf32> to vector<1xf32>
    %55 = vector.shape_cast %54 : vector<1xf32> to vector<1x1x1xf32>
    %56 = vector.extract %55[0, 0, 0] : f32 from vector<1x1x1xf32>
    %57 = vector.broadcast %56 : f32 to vector<1x1xf32>
    %58 = arith.minimumf %52, %57 : vector<1x1xf32>
    %c0_26 = arith.constant 0 : index
    %c0_27 = arith.constant 0 : index
    %c2_28 = arith.constant 2 : index
    %59 = vector.load %arg4[%c0_26, %c0_27, %c2_28] : memref<1x3x4xf32, #tpu.memory_space<vmem>>, vector<1x1x1xf32>
    %60 = vector.shape_cast %59 : vector<1x1x1xf32> to vector<1x1xf32>
    %61 = vector.shape_cast %58 : vector<1x1xf32> to vector<1x1x1xf32>
    tpu.vector_store %arg4[%c0_26, %c0_27, %c2_28], %61 {strides = array<i32>} : memref<1x3x4xf32, #tpu.memory_space<vmem>>, vector<1x1x1xf32>,
    %c0_29 = arith.constant 0 : index
    %c0_30 = arith.constant 0 : index
    %c3_31 = arith.constant 3 : index
    %62 = vector.load %arg4[%c0_29, %c0_30, %c3_31] : memref<1x3x4xf32, #tpu.memory_space<vmem>>, vector<1x1x1xf32>
    %63 = vector.shape_cast %62 : vector<1x1x1xf32> to vector<1x1xf32>
    %64 = vector.shape_cast %27 : vector<2x128xf32> to vector<1x2x128xf32>
    %cst_32 = arith.constant dense<0xFF800000> : vector<1xf32>
    %65 = vector.multi_reduction <maximumf>, %64, %cst_32 [1, 2] : vector<1x2x128xf32> to vector<1xf32>
    %66 = vector.shape_cast %65 : vector<1xf32> to vector<1x1x1xf32>
    %67 = vector.extract %66[0, 0, 0] : f32 from vector<1x1x1xf32>
    %68 = vector.broadcast %67 : f32 to vector<1x1xf32>
    %69 = arith.maximumf %63, %68 : vector<1x1xf32>
    %c0_33 = arith.constant 0 : index
    %c0_34 = arith.constant 0 : index
    %c3_35 = arith.constant 3 : index
    %70 = vector.load %arg4[%c0_33, %c0_34, %c3_35] : memref<1x3x4xf32, #tpu.memory_space<vmem>>, vector<1x1x1xf32>
    %71 = vector.shape_cast %70 : vector<1x1x1xf32> to vector<1x1xf32>
    %72 = vector.shape_cast %69 : vector<1x1xf32> to vector<1x1x1xf32>
    tpu.vector_store %arg4[%c0_33, %c0_34, %c3_35], %72 {strides = array<i32>} : memref<1x3x4xf32, #tpu.memory_space<vmem>>, vector<1x1x1xf32>,
    %c1_36 = arith.constant 1 : index
    %c0_37 = arith.constant 0 : index
    %73 = memref.load %arg3[%c1_36, %c0_37] : memref<3x4xf32, #tpu.memory_space<smem>>
    %74 = vector.extract_strided_slice %4 {offsets = [0, 0, 0], sizes = [1, 2, 128], strides = [1, 1, 1]} : vector<4x2x128xf32> to vector<1x2x128xf32>
    %75 = vector.shape_cast %74 : vector<1x2x128xf32> to vector<2x128xf32>
    %76 = vector.broadcast %73 : f32 to vector<2x128xf32>
    %77 = arith.mulf %76, %75 : vector<2x128xf32>
    %c1_38 = arith.constant 1 : index
    %c1_39 = arith.constant 1 : index
    %78 = memref.load %arg3[%c1_38, %c1_39] : memref<3x4xf32, #tpu.memory_space<smem>>
    %79 = vector.extract_strided_slice %4 {offsets = [1, 0, 0], sizes = [1, 2, 128], strides = [1, 1, 1]} : vector<4x2x128xf32> to vector<1x2x128xf32>
    %80 = vector.shape_cast %79 : vector<1x2x128xf32> to vector<2x128xf32>
    %81 = vector.broadcast %78 : f32 to vector<2x128xf32>
    %82 = arith.mulf %81, %80 : vector<2x128xf32>
    %83 = arith.addf %77, %82 : vector<2x128xf32>
    %c1_40 = arith.constant 1 : index
    %c2_41 = arith.constant 2 : index
    %84 = memref.load %arg3[%c1_40, %c2_41] : memref<3x4xf32, #tpu.memory_space<smem>>
    %85 = vector.extract_strided_slice %4 {offsets = [2, 0, 0], sizes = [1, 2, 128], strides = [1, 1, 1]} : vector<4x2x128xf32> to vector<1x2x128xf32>
    %86 = vector.shape_cast %85 : vector<1x2x128xf32> to vector<2x128xf32>
    %87 = vector.broadcast %84 : f32 to vector<2x128xf32>
    %88 = arith.mulf %87, %86 : vector<2x128xf32>
    %89 = arith.addf %83, %88 : vector<2x128xf32>
    %c1_42 = arith.constant 1 : index
    %c3_43 = arith.constant 3 : index
    %90 = memref.load %arg3[%c1_42, %c3_43] : memref<3x4xf32, #tpu.memory_space<smem>>
    %91 = vector.extract_strided_slice %4 {offsets = [3, 0, 0], sizes = [1, 2, 128], strides = [1, 1, 1]} : vector<4x2x128xf32> to vector<1x2x128xf32>
    %92 = vector.shape_cast %91 : vector<1x2x128xf32> to vector<2x128xf32>
    %93 = vector.broadcast %90 : f32 to vector<2x128xf32>
    %94 = arith.mulf %93, %92 : vector<2x128xf32>
    %95 = arith.addf %89, %94 : vector<2x128xf32>
    %c0_44 = arith.constant 0 : index
    %c1_45 = arith.constant 1 : index
    %c0_46 = arith.constant 0 : index
    %96 = vector.load %arg4[%c0_44, %c1_45, %c0_46] : memref<1x3x4xf32, #tpu.memory_space<vmem>>, vector<1x1x1xf32>
    %97 = vector.shape_cast %96 : vector<1x1x1xf32> to vector<1x1xf32>
    %98 = vector.shape_cast %95 : vector<2x128xf32> to vector<1x2x128xf32>
    %cst_47 = arith.constant dense<0.000000e+00> : vector<1xf32>
    %99 = vector.multi_reduction <add>, %98, %cst_47 [1, 2] : vector<1x2x128xf32> to vector<1xf32>
    %100 = vector.shape_cast %99 : vector<1xf32> to vector<1x1x1xf32>
    %101 = vector.extract %100[0, 0, 0] : f32 from vector<1x1x1xf32>
    %102 = vector.broadcast %101 : f32 to vector<1x1xf32>
    %103 = arith.addf %97, %102 : vector<1x1xf32>
    %c0_48 = arith.constant 0 : index
    %c1_49 = arith.constant 1 : index
    %c0_50 = arith.constant 0 : index
    %104 = vector.load %arg4[%c0_48, %c1_49, %c0_50] : memref<1x3x4xf32, #tpu.memory_space<vmem>>, vector<1x1x1xf32>
    %105 = vector.shape_cast %104 : vector<1x1x1xf32> to vector<1x1xf32>
    %106 = vector.shape_cast %103 : vector<1x1xf32> to vector<1x1x1xf32>
    tpu.vector_store %arg4[%c0_48, %c1_49, %c0_50], %106 {strides = array<i32>} : memref<1x3x4xf32, #tpu.memory_space<vmem>>, vector<1x1x1xf32>,
    %c0_51 = arith.constant 0 : index
    %c1_52 = arith.constant 1 : index
    %c1_53 = arith.constant 1 : index
    %107 = vector.load %arg4[%c0_51, %c1_52, %c1_53] : memref<1x3x4xf32, #tpu.memory_space<vmem>>, vector<1x1x1xf32>
    %108 = vector.shape_cast %107 : vector<1x1x1xf32> to vector<1x1xf32>
    %109 = arith.mulf %95, %95 : vector<2x128xf32>
    %110 = vector.shape_cast %109 : vector<2x128xf32> to vector<1x2x128xf32>
    %cst_54 = arith.constant dense<0.000000e+00> : vector<1xf32>
    %111 = vector.multi_reduction <add>, %110, %cst_54 [1, 2] : vector<1x2x128xf32> to vector<1xf32>
    %112 = vector.shape_cast %111 : vector<1xf32> to vector<1x1x1xf32>
    %113 = vector.extract %112[0, 0, 0] : f32 from vector<1x1x1xf32>
    %114 = vector.broadcast %113 : f32 to vector<1x1xf32>
    %115 = arith.addf %108, %114 : vector<1x1xf32>
    %c0_55 = arith.constant 0 : index
    %c1_56 = arith.constant 1 : index
    %c1_57 = arith.constant 1 : index
    %116 = vector.load %arg4[%c0_55, %c1_56, %c1_57] : memref<1x3x4xf32, #tpu.memory_space<vmem>>, vector<1x1x1xf32>
    %117 = vector.shape_cast %116 : vector<1x1x1xf32> to vector<1x1xf32>
    %118 = vector.shape_cast %115 : vector<1x1xf32> to vector<1x1x1xf32>
    tpu.vector_store %arg4[%c0_55, %c1_56, %c1_57], %118 {strides = array<i32>} : memref<1x3x4xf32, #tpu.memory_space<vmem>>, vector<1x1x1xf32>,
    %c0_58 = arith.constant 0 : index
    %c1_59 = arith.constant 1 : index
    %c2_60 = arith.constant 2 : index
    %119 = vector.load %arg4[%c0_58, %c1_59, %c2_60] : memref<1x3x4xf32, #tpu.memory_space<vmem>>, vector<1x1x1xf32>
    %120 = vector.shape_cast %119 : vector<1x1x1xf32> to vector<1x1xf32>
    %121 = vector.shape_cast %95 : vector<2x128xf32> to vector<1x2x128xf32>
    %cst_61 = arith.constant dense<0x7F800000> : vector<1xf32>
    %122 = vector.multi_reduction <minimumf>, %121, %cst_61 [1, 2] : vector<1x2x128xf32> to vector<1xf32>
    %123 = vector.shape_cast %122 : vector<1xf32> to vector<1x1x1xf32>
    %124 = vector.extract %123[0, 0, 0] : f32 from vector<1x1x1xf32>
    %125 = vector.broadcast %124 : f32 to vector<1x1xf32>
    %126 = arith.minimumf %120, %125 : vector<1x1xf32>
    %c0_62 = arith.constant 0 : index
    %c1_63 = arith.constant 1 : index
    %c2_64 = arith.constant 2 : index
    %127 = vector.load %arg4[%c0_62, %c1_63, %c2_64] : memref<1x3x4xf32, #tpu.memory_space<vmem>>, vector<1x1x1xf32>
    %128 = vector.shape_cast %127 : vector<1x1x1xf32> to vector<1x1xf32>
    %129 = vector.shape_cast %126 : vector<1x1xf32> to vector<1x1x1xf32>
    tpu.vector_store %arg4[%c0_62, %c1_63, %c2_64], %129 {strides = array<i32>} : memref<1x3x4xf32, #tpu.memory_space<vmem>>, vector<1x1x1xf32>,
    %c0_65 = arith.constant 0 : index
    %c1_66 = arith.constant 1 : index
    %c3_67 = arith.constant 3 : index
    %130 = vector.load %arg4[%c0_65, %c1_66, %c3_67] : memref<1x3x4xf32, #tpu.memory_space<vmem>>, vector<1x1x1xf32>
    %131 = vector.shape_cast %130 : vector<1x1x1xf32> to vector<1x1xf32>
    %132 = vector.shape_cast %95 : vector<2x128xf32> to vector<1x2x128xf32>
    %cst_68 = arith.constant dense<0xFF800000> : vector<1xf32>
    %133 = vector.multi_reduction <maximumf>, %132, %cst_68 [1, 2] : vector<1x2x128xf32> to vector<1xf32>
    %134 = vector.shape_cast %133 : vector<1xf32> to vector<1x1x1xf32>
    %135 = vector.extract %134[0, 0, 0] : f32 from vector<1x1x1xf32>
    %136 = vector.broadcast %135 : f32 to vector<1x1xf32>
    %137 = arith.maximumf %131, %136 : vector<1x1xf32>
    %c0_69 = arith.constant 0 : index
    %c1_70 = arith.constant 1 : index
    %c3_71 = arith.constant 3 : index
    %138 = vector.load %arg4[%c0_69, %c1_70, %c3_71] : memref<1x3x4xf32, #tpu.memory_space<vmem>>, vector<1x1x1xf32>
    %139 = vector.shape_cast %138 : vector<1x1x1xf32> to vector<1x1xf32>
    %140 = vector.shape_cast %137 : vector<1x1xf32> to vector<1x1x1xf32>
    tpu.vector_store %arg4[%c0_69, %c1_70, %c3_71], %140 {strides = array<i32>} : memref<1x3x4xf32, #tpu.memory_space<vmem>>, vector<1x1x1xf32>,
    %c2_72 = arith.constant 2 : index
    %c0_73 = arith.constant 0 : index
    %141 = memref.load %arg3[%c2_72, %c0_73] : memref<3x4xf32, #tpu.memory_space<smem>>
    %142 = vector.extract_strided_slice %4 {offsets = [0, 0, 0], sizes = [1, 2, 128], strides = [1, 1, 1]} : vector<4x2x128xf32> to vector<1x2x128xf32>
    %143 = vector.shape_cast %142 : vector<1x2x128xf32> to vector<2x128xf32>
    %144 = vector.broadcast %141 : f32 to vector<2x128xf32>
    %145 = arith.mulf %144, %143 : vector<2x128xf32>
    %c2_74 = arith.constant 2 : index
    %c1_75 = arith.constant 1 : index
    %146 = memref.load %arg3[%c2_74, %c1_75] : memref<3x4xf32, #tpu.memory_space<smem>>
    %147 = vector.extract_strided_slice %4 {offsets = [1, 0, 0], sizes = [1, 2, 128], strides = [1, 1, 1]} : vector<4x2x128xf32> to vector<1x2x128xf32>
    %148 = vector.shape_cast %147 : vector<1x2x128xf32> to vector<2x128xf32>
    %149 = vector.broadcast %146 : f32 to vector<2x128xf32>
    %150 = arith.mulf %149, %148 : vector<2x128xf32>
    %151 = arith.addf %145, %150 : vector<2x128xf32>
    %c2_76 = arith.constant 2 : index
    %c2_77 = arith.constant 2 : index
    %152 = memref.load %arg3[%c2_76, %c2_77] : memref<3x4xf32, #tpu.memory_space<smem>>
    %153 = vector.extract_strided_slice %4 {offsets = [2, 0, 0], sizes = [1, 2, 128], strides = [1, 1, 1]} : vector<4x2x128xf32> to vector<1x2x128xf32>
    %154 = vector.shape_cast %153 : vector<1x2x128xf32> to vector<2x128xf32>
    %155 = vector.broadcast %152 : f32 to vector<2x128xf32>
    %156 = arith.mulf %155, %154 : vector<2x128xf32>
    %157 = arith.addf %151, %156 : vector<2x128xf32>
    %c2_78 = arith.constant 2 : index
    %c3_79 = arith.constant 3 : index
    %158 = memref.load %arg3[%c2_78, %c3_79] : memref<3x4xf32, #tpu.memory_space<smem>>
    %159 = vector.extract_strided_slice %4 {offsets = [3, 0, 0], sizes = [1, 2, 128], strides = [1, 1, 1]} : vector<4x2x128xf32> to vector<1x2x128xf32>
    %160 = vector.shape_cast %159 : vector<1x2x128xf32> to vector<2x128xf32>
    %161 = vector.broadcast %158 : f32 to vector<2x128xf32>
    %162 = arith.mulf %161, %160 : vector<2x128xf32>
    %163 = arith.addf %157, %162 : vector<2x128xf32>
    %c0_80 = arith.constant 0 : index
    %c2_81 = arith.constant 2 : index
    %c0_82 = arith.constant 0 : index
    %164 = vector.load %arg4[%c0_80, %c2_81, %c0_82] : memref<1x3x4xf32, #tpu.memory_space<vmem>>, vector<1x1x1xf32>
    %165 = vector.shape_cast %164 : vector<1x1x1xf32> to vector<1x1xf32>
    %166 = vector.shape_cast %163 : vector<2x128xf32> to vector<1x2x128xf32>
    %cst_83 = arith.constant dense<0.000000e+00> : vector<1xf32>
    %167 = vector.multi_reduction <add>, %166, %cst_83 [1, 2] : vector<1x2x128xf32> to vector<1xf32>
    %168 = vector.shape_cast %167 : vector<1xf32> to vector<1x1x1xf32>
    %169 = vector.extract %168[0, 0, 0] : f32 from vector<1x1x1xf32>
    %170 = vector.broadcast %169 : f32 to vector<1x1xf32>
    %171 = arith.addf %165, %170 : vector<1x1xf32>
    %c0_84 = arith.constant 0 : index
    %c2_85 = arith.constant 2 : index
    %c0_86 = arith.constant 0 : index
    %172 = vector.load %arg4[%c0_84, %c2_85, %c0_86] : memref<1x3x4xf32, #tpu.memory_space<vmem>>, vector<1x1x1xf32>
    %173 = vector.shape_cast %172 : vector<1x1x1xf32> to vector<1x1xf32>
    %174 = vector.shape_cast %171 : vector<1x1xf32> to vector<1x1x1xf32>
    tpu.vector_store %arg4[%c0_84, %c2_85, %c0_86], %174 {strides = array<i32>} : memref<1x3x4xf32, #tpu.memory_space<vmem>>, vector<1x1x1xf32>,
    %c0_87 = arith.constant 0 : index
    %c2_88 = arith.constant 2 : index
    %c1_89 = arith.constant 1 : index
    %175 = vector.load %arg4[%c0_87, %c2_88, %c1_89] : memref<1x3x4xf32, #tpu.memory_space<vmem>>, vector<1x1x1xf32>
    %176 = vector.shape_cast %175 : vector<1x1x1xf32> to vector<1x1xf32>
    %177 = arith.mulf %163, %163 : vector<2x128xf32>
    %178 = vector.shape_cast %177 : vector<2x128xf32> to vector<1x2x128xf32>
    %cst_90 = arith.constant dense<0.000000e+00> : vector<1xf32>
    %179 = vector.multi_reduction <add>, %178, %cst_90 [1, 2] : vector<1x2x128xf32> to vector<1xf32>
    %180 = vector.shape_cast %179 : vector<1xf32> to vector<1x1x1xf32>
    %181 = vector.extract %180[0, 0, 0] : f32 from vector<1x1x1xf32>
    %182 = vector.broadcast %181 : f32 to vector<1x1xf32>
    %183 = arith.addf %176, %182 : vector<1x1xf32>
    %c0_91 = arith.constant 0 : index
    %c2_92 = arith.constant 2 : index
    %c1_93 = arith.constant 1 : index
    %184 = vector.load %arg4[%c0_91, %c2_92, %c1_93] : memref<1x3x4xf32, #tpu.memory_space<vmem>>, vector<1x1x1xf32>
    %185 = vector.shape_cast %184 : vector<1x1x1xf32> to vector<1x1xf32>
    %186 = vector.shape_cast %183 : vector<1x1xf32> to vector<1x1x1xf32>
    tpu.vector_store %arg4[%c0_91, %c2_92, %c1_93], %186 {strides = array<i32>} : memref<1x3x4xf32, #tpu.memory_space<vmem>>, vector<1x1x1xf32>,
    %c0_94 = arith.constant 0 : index
    %c2_95 = arith.constant 2 : index
    %c2_96 = arith.constant 2 : index
    %187 = vector.load %arg4[%c0_94, %c2_95, %c2_96] : memref<1x3x4xf32, #tpu.memory_space<vmem>>, vector<1x1x1xf32>
    %188 = vector.shape_cast %187 : vector<1x1x1xf32> to vector<1x1xf32>
    %189 = vector.shape_cast %163 : vector<2x128xf32> to vector<1x2x128xf32>
    %cst_97 = arith.constant dense<0x7F800000> : vector<1xf32>
    %190 = vector.multi_reduction <minimumf>, %189, %cst_97 [1, 2] : vector<1x2x128xf32> to vector<1xf32>
    %191 = vector.shape_cast %190 : vector<1xf32> to vector<1x1x1xf32>
    %192 = vector.extract %191[0, 0, 0] : f32 from vector<1x1x1xf32>
    %193 = vector.broadcast %192 : f32 to vector<1x1xf32>
    %194 = arith.minimumf %188, %193 : vector<1x1xf32>
    %c0_98 = arith.constant 0 : index
    %c2_99 = arith.constant 2 : index
    %c2_100 = arith.constant 2 : index
    %195 = vector.load %arg4[%c0_98, %c2_99, %c2_100] : memref<1x3x4xf32, #tpu.memory_space<vmem>>, vector<1x1x1xf32>
    %196 = vector.shape_cast %195 : vector<1x1x1xf32> to vector<1x1xf32>
    %197 = vector.shape_cast %194 : vector<1x1xf32> to vector<1x1x1xf32>
    tpu.vector_store %arg4[%c0_98, %c2_99, %c2_100], %197 {strides = array<i32>} : memref<1x3x4xf32, #tpu.memory_space<vmem>>, vector<1x1x1xf32>,
    %c0_101 = arith.constant 0 : index
    %c2_102 = arith.constant 2 : index
    %c3_103 = arith.constant 3 : index
    %198 = vector.load %arg4[%c0_101, %c2_102, %c3_103] : memref<1x3x4xf32, #tpu.memory_space<vmem>>, vector<1x1x1xf32>
    %199 = vector.shape_cast %198 : vector<1x1x1xf32> to vector<1x1xf32>
    %200 = vector.shape_cast %163 : vector<2x128xf32> to vector<1x2x128xf32>
    %cst_104 = arith.constant dense<0xFF800000> : vector<1xf32>
    %201 = vector.multi_reduction <maximumf>, %200, %cst_104 [1, 2] : vector<1x2x128xf32> to vector<1xf32>
    %202 = vector.shape_cast %201 : vector<1xf32> to vector<1x1x1xf32>
    %203 = vector.extract %202[0, 0, 0] : f32 from vector<1x1x1xf32>
    %204 = vector.broadcast %203 : f32 to vector<1x1xf32>
    %205 = arith.maximumf %199, %204 : vector<1x1xf32>
    %c0_105 = arith.constant 0 : index
    %c2_106 = arith.constant 2 : index
    %c3_107 = arith.constant 3 : index
    %206 = vector.load %arg4[%c0_105, %c2_106, %c3_107] : memref<1x3x4xf32, #tpu.memory_space<vmem>>, vector<1x1x1xf32>
    %207 = vector.shape_cast %206 : vector<1x1x1xf32> to vector<1x1xf32>
    %208 = vector.shape_cast %205 : vector<1x1xf32> to vector<1x1x1xf32>
    tpu.vector_store %arg4[%c0_105, %c2_106, %c3_107], %208 {strides = array<i32>} : memref<1x3x4xf32, #tpu.memory_space<vmem>>, vector<1x1x1xf32>,
    return
  }
  func.func @transform_0(%arg0: i32, %arg1: i32) -> (i32, i32, i32, i32) {
    %c0_i32 = arith.constant 0 : i32
    %c0_i32_0 = arith.constant 0 : i32
    %c0_i32_1 = arith.constant 0 : i32
    return %arg0, %c0_i32, %arg1, %c0_i32_0 : i32, i32, i32, i32
  }
  func.func @transform_1(%arg0: i32, %arg1: i32) -> (i32, i32) {
    %c0_i32 = arith.constant 0 : i32
    %c0_i32_0 = arith.constant 0 : i32
    %c0_i32_1 = arith.constant 0 : i32
    return %c0_i32, %c0_i32_0 : i32, i32
  }
  func.func @transform_2(%arg0: i32, %arg1: i32) -> (i32, i32, i32) {
    %c0_i32 = arith.constant 0 : i32
    %c0_i32_0 = arith.constant 0 : i32
    %c0_i32_1 = arith.constant 0 : i32
    return %arg0, %c0_i32, %c0_i32_0 : i32, i32, i32
  }
}

module attributes {stable_mosaic.version = 11 : i64} {
  func.func @_apply_kernel(%arg0: i32, %arg1: i32, %arg2: memref<1x4x2x128xf32, #tpu.memory_space<vmem>>, %arg3: memref<3x4xf32, #tpu.memory_space<smem>>, %arg4: memref<3x4xf32, #tpu.memory_space<smem>>, %arg5: memref<1x3x2x128xf32, #tpu.memory_space<vmem>>) attributes {dimension_semantics = [#tpu.dimension_semantics<parallel>, #tpu.dimension_semantics<parallel>], iteration_bounds = array<i64: 2, 1>, scalar_prefetch = 0 : i64, scratch_operands = 0 : i64, tpu.core_type = #tpu.core_type<tc>, window_params = [{transform_indices = @transform_0, window_bounds = array<i64: 1, 4, 2, 128>}, {transform_indices = @transform_1, window_bounds = array<i64: 3, 4>}, {transform_indices = @transform_2, window_bounds = array<i64: 3, 4>}, {transform_indices = @transform_3, window_bounds = array<i64: 1, 3, 2, 128>}]} {
    %c0 = arith.constant 0 : index
    %c0_0 = arith.constant 0 : index
    %c0_1 = arith.constant 0 : index
    %c0_2 = arith.constant 0 : index
    %0 = vector.load %arg2[%c0, %c0_0, %c0_1, %c0_2] : memref<1x4x2x128xf32, #tpu.memory_space<vmem>>, vector<1x4x2x128xf32>
    %1 = vector.shape_cast %0 : vector<1x4x2x128xf32> to vector<4x2x128xf32>
    %c0_3 = arith.constant 0 : index
    %c0_4 = arith.constant 0 : index
    %2 = memref.load %arg3[%c0_3, %c0_4] : memref<3x4xf32, #tpu.memory_space<smem>>
    %3 = vector.extract_strided_slice %1 {offsets = [0, 0, 0], sizes = [1, 2, 128], strides = [1, 1, 1]} : vector<4x2x128xf32> to vector<1x2x128xf32>
    %4 = vector.shape_cast %3 : vector<1x2x128xf32> to vector<2x128xf32>
    %5 = vector.broadcast %2 : f32 to vector<2x128xf32>
    %6 = arith.mulf %5, %4 : vector<2x128xf32>
    %c0_5 = arith.constant 0 : index
    %c1 = arith.constant 1 : index
    %7 = memref.load %arg3[%c0_5, %c1] : memref<3x4xf32, #tpu.memory_space<smem>>
    %8 = vector.extract_strided_slice %1 {offsets = [1, 0, 0], sizes = [1, 2, 128], strides = [1, 1, 1]} : vector<4x2x128xf32> to vector<1x2x128xf32>
    %9 = vector.shape_cast %8 : vector<1x2x128xf32> to vector<2x128xf32>
    %10 = vector.broadcast %7 : f32 to vector<2x128xf32>
    %11 = arith.mulf %10, %9 : vector<2x128xf32>
    %12 = arith.addf %6, %11 : vector<2x128xf32>
    %c0_6 = arith.constant 0 : index
    %c2 = arith.constant 2 : index
    %13 = memref.load %arg3[%c0_6, %c2] : memref<3x4xf32, #tpu.memory_space<smem>>
    %14 = vector.extract_strided_slice %1 {offsets = [2, 0, 0], sizes = [1, 2, 128], strides = [1, 1, 1]} : vector<4x2x128xf32> to vector<1x2x128xf32>
    %15 = vector.shape_cast %14 : vector<1x2x128xf32> to vector<2x128xf32>
    %16 = vector.broadcast %13 : f32 to vector<2x128xf32>
    %17 = arith.mulf %16, %15 : vector<2x128xf32>
    %18 = arith.addf %12, %17 : vector<2x128xf32>
    %c0_7 = arith.constant 0 : index
    %c3 = arith.constant 3 : index
    %19 = memref.load %arg3[%c0_7, %c3] : memref<3x4xf32, #tpu.memory_space<smem>>
    %20 = vector.extract_strided_slice %1 {offsets = [3, 0, 0], sizes = [1, 2, 128], strides = [1, 1, 1]} : vector<4x2x128xf32> to vector<1x2x128xf32>
    %21 = vector.shape_cast %20 : vector<1x2x128xf32> to vector<2x128xf32>
    %22 = vector.broadcast %19 : f32 to vector<2x128xf32>
    %23 = arith.mulf %22, %21 : vector<2x128xf32>
    %24 = arith.addf %18, %23 : vector<2x128xf32>
    %c0_8 = arith.constant 0 : index
    %c0_9 = arith.constant 0 : index
    %25 = memref.load %arg4[%c0_8, %c0_9] : memref<3x4xf32, #tpu.memory_space<smem>>
    %26 = vector.broadcast %25 : f32 to vector<2x128xf32>
    %27 = arith.addf %24, %26 : vector<2x128xf32>
    %cst = arith.constant 0.000000e+00 : f32
    %28 = vector.broadcast %cst : f32 to vector<2x128xf32>
    %29 = arith.cmpf oge, %27, %28 : vector<2x128xf32>
    %c0_10 = arith.constant 0 : index
    %c1_11 = arith.constant 1 : index
    %30 = memref.load %arg4[%c0_10, %c1_11] : memref<3x4xf32, #tpu.memory_space<smem>>
    %c0_12 = arith.constant 0 : index
    %c2_13 = arith.constant 2 : index
    %31 = memref.load %arg4[%c0_12, %c2_13] : memref<3x4xf32, #tpu.memory_space<smem>>
    %32 = vector.broadcast %30 : f32 to vector<2x128xf32>
    %33 = vector.broadcast %31 : f32 to vector<2x128xf32>
    %34 = arith.select %29, %32, %33 : vector<2x128xi1>, vector<2x128xf32>
    %35 = arith.mulf %27, %34 : vector<2x128xf32>
    %c0_14 = arith.constant 0 : index
    %c3_15 = arith.constant 3 : index
    %36 = memref.load %arg4[%c0_14, %c3_15] : memref<3x4xf32, #tpu.memory_space<smem>>
    %37 = vector.broadcast %36 : f32 to vector<2x128xf32>
    %38 = arith.addf %35, %37 : vector<2x128xf32>
    %c0_16 = arith.constant 0 : index
    %c0_17 = arith.constant 0 : index
    %c0_18 = arith.constant 0 : index
    %c0_19 = arith.constant 0 : index
    %39 = vector.load %arg5[%c0_16, %c0_17, %c0_18, %c0_19] : memref<1x3x2x128xf32, #tpu.memory_space<vmem>>, vector<1x1x2x128xf32>
    %40 = vector.shape_cast %39 : vector<1x1x2x128xf32> to vector<2x128xf32>
    %41 = vector.shape_cast %38 : vector<2x128xf32> to vector<1x1x2x128xf32>
    tpu.vector_store %arg5[%c0_16, %c0_17, %c0_18, %c0_19], %41 {strides = array<i32>} : memref<1x3x2x128xf32, #tpu.memory_space<vmem>>, vector<1x1x2x128xf32>,
    %c1_20 = arith.constant 1 : index
    %c0_21 = arith.constant 0 : index
    %42 = memref.load %arg3[%c1_20, %c0_21] : memref<3x4xf32, #tpu.memory_space<smem>>
    %43 = vector.extract_strided_slice %1 {offsets = [0, 0, 0], sizes = [1, 2, 128], strides = [1, 1, 1]} : vector<4x2x128xf32> to vector<1x2x128xf32>
    %44 = vector.shape_cast %43 : vector<1x2x128xf32> to vector<2x128xf32>
    %45 = vector.broadcast %42 : f32 to vector<2x128xf32>
    %46 = arith.mulf %45, %44 : vector<2x128xf32>
    %c1_22 = arith.constant 1 : index
    %c1_23 = arith.constant 1 : index
    %47 = memref.load %arg3[%c1_22, %c1_23] : memref<3x4xf32, #tpu.memory_space<smem>>
    %48 = vector.extract_strided_slice %1 {offsets = [1, 0, 0], sizes = [1, 2, 128], strides = [1, 1, 1]} : vector<4x2x128xf32> to vector<1x2x128xf32>
    %49 = vector.shape_cast %48 : vector<1x2x128xf32> to vector<2x128xf32>
    %50 = vector.broadcast %47 : f32 to vector<2x128xf32>
    %51 = arith.mulf %50, %49 : vector<2x128xf32>
    %52 = arith.addf %46, %51 : vector<2x128xf32>
    %c1_24 = arith.constant 1 : index
    %c2_25 = arith.constant 2 : index
    %53 = memref.load %arg3[%c1_24, %c2_25] : memref<3x4xf32, #tpu.memory_space<smem>>
    %54 = vector.extract_strided_slice %1 {offsets = [2, 0, 0], sizes = [1, 2, 128], strides = [1, 1, 1]} : vector<4x2x128xf32> to vector<1x2x128xf32>
    %55 = vector.shape_cast %54 : vector<1x2x128xf32> to vector<2x128xf32>
    %56 = vector.broadcast %53 : f32 to vector<2x128xf32>
    %57 = arith.mulf %56, %55 : vector<2x128xf32>
    %58 = arith.addf %52, %57 : vector<2x128xf32>
    %c1_26 = arith.constant 1 : index
    %c3_27 = arith.constant 3 : index
    %59 = memref.load %arg3[%c1_26, %c3_27] : memref<3x4xf32, #tpu.memory_space<smem>>
    %60 = vector.extract_strided_slice %1 {offsets = [3, 0, 0], sizes = [1, 2, 128], strides = [1, 1, 1]} : vector<4x2x128xf32> to vector<1x2x128xf32>
    %61 = vector.shape_cast %60 : vector<1x2x128xf32> to vector<2x128xf32>
    %62 = vector.broadcast %59 : f32 to vector<2x128xf32>
    %63 = arith.mulf %62, %61 : vector<2x128xf32>
    %64 = arith.addf %58, %63 : vector<2x128xf32>
    %c1_28 = arith.constant 1 : index
    %c0_29 = arith.constant 0 : index
    %65 = memref.load %arg4[%c1_28, %c0_29] : memref<3x4xf32, #tpu.memory_space<smem>>
    %66 = vector.broadcast %65 : f32 to vector<2x128xf32>
    %67 = arith.addf %64, %66 : vector<2x128xf32>
    %cst_30 = arith.constant 0.000000e+00 : f32
    %68 = vector.broadcast %cst_30 : f32 to vector<2x128xf32>
    %69 = arith.cmpf oge, %67, %68 : vector<2x128xf32>
    %c1_31 = arith.constant 1 : index
    %c1_32 = arith.constant 1 : index
    %70 = memref.load %arg4[%c1_31, %c1_32] : memref<3x4xf32, #tpu.memory_space<smem>>
    %c1_33 = arith.constant 1 : index
    %c2_34 = arith.constant 2 : index
    %71 = memref.load %arg4[%c1_33, %c2_34] : memref<3x4xf32, #tpu.memory_space<smem>>
    %72 = vector.broadcast %70 : f32 to vector<2x128xf32>
    %73 = vector.broadcast %71 : f32 to vector<2x128xf32>
    %74 = arith.select %69, %72, %73 : vector<2x128xi1>, vector<2x128xf32>
    %75 = arith.mulf %67, %74 : vector<2x128xf32>
    %c1_35 = arith.constant 1 : index
    %c3_36 = arith.constant 3 : index
    %76 = memref.load %arg4[%c1_35, %c3_36] : memref<3x4xf32, #tpu.memory_space<smem>>
    %77 = vector.broadcast %76 : f32 to vector<2x128xf32>
    %78 = arith.addf %75, %77 : vector<2x128xf32>
    %c0_37 = arith.constant 0 : index
    %c1_38 = arith.constant 1 : index
    %c0_39 = arith.constant 0 : index
    %c0_40 = arith.constant 0 : index
    %79 = vector.load %arg5[%c0_37, %c1_38, %c0_39, %c0_40] : memref<1x3x2x128xf32, #tpu.memory_space<vmem>>, vector<1x1x2x128xf32>
    %80 = vector.shape_cast %79 : vector<1x1x2x128xf32> to vector<2x128xf32>
    %81 = vector.shape_cast %78 : vector<2x128xf32> to vector<1x1x2x128xf32>
    tpu.vector_store %arg5[%c0_37, %c1_38, %c0_39, %c0_40], %81 {strides = array<i32>} : memref<1x3x2x128xf32, #tpu.memory_space<vmem>>, vector<1x1x2x128xf32>,
    %c2_41 = arith.constant 2 : index
    %c0_42 = arith.constant 0 : index
    %82 = memref.load %arg3[%c2_41, %c0_42] : memref<3x4xf32, #tpu.memory_space<smem>>
    %83 = vector.extract_strided_slice %1 {offsets = [0, 0, 0], sizes = [1, 2, 128], strides = [1, 1, 1]} : vector<4x2x128xf32> to vector<1x2x128xf32>
    %84 = vector.shape_cast %83 : vector<1x2x128xf32> to vector<2x128xf32>
    %85 = vector.broadcast %82 : f32 to vector<2x128xf32>
    %86 = arith.mulf %85, %84 : vector<2x128xf32>
    %c2_43 = arith.constant 2 : index
    %c1_44 = arith.constant 1 : index
    %87 = memref.load %arg3[%c2_43, %c1_44] : memref<3x4xf32, #tpu.memory_space<smem>>
    %88 = vector.extract_strided_slice %1 {offsets = [1, 0, 0], sizes = [1, 2, 128], strides = [1, 1, 1]} : vector<4x2x128xf32> to vector<1x2x128xf32>
    %89 = vector.shape_cast %88 : vector<1x2x128xf32> to vector<2x128xf32>
    %90 = vector.broadcast %87 : f32 to vector<2x128xf32>
    %91 = arith.mulf %90, %89 : vector<2x128xf32>
    %92 = arith.addf %86, %91 : vector<2x128xf32>
    %c2_45 = arith.constant 2 : index
    %c2_46 = arith.constant 2 : index
    %93 = memref.load %arg3[%c2_45, %c2_46] : memref<3x4xf32, #tpu.memory_space<smem>>
    %94 = vector.extract_strided_slice %1 {offsets = [2, 0, 0], sizes = [1, 2, 128], strides = [1, 1, 1]} : vector<4x2x128xf32> to vector<1x2x128xf32>
    %95 = vector.shape_cast %94 : vector<1x2x128xf32> to vector<2x128xf32>
    %96 = vector.broadcast %93 : f32 to vector<2x128xf32>
    %97 = arith.mulf %96, %95 : vector<2x128xf32>
    %98 = arith.addf %92, %97 : vector<2x128xf32>
    %c2_47 = arith.constant 2 : index
    %c3_48 = arith.constant 3 : index
    %99 = memref.load %arg3[%c2_47, %c3_48] : memref<3x4xf32, #tpu.memory_space<smem>>
    %100 = vector.extract_strided_slice %1 {offsets = [3, 0, 0], sizes = [1, 2, 128], strides = [1, 1, 1]} : vector<4x2x128xf32> to vector<1x2x128xf32>
    %101 = vector.shape_cast %100 : vector<1x2x128xf32> to vector<2x128xf32>
    %102 = vector.broadcast %99 : f32 to vector<2x128xf32>
    %103 = arith.mulf %102, %101 : vector<2x128xf32>
    %104 = arith.addf %98, %103 : vector<2x128xf32>
    %c2_49 = arith.constant 2 : index
    %c0_50 = arith.constant 0 : index
    %105 = memref.load %arg4[%c2_49, %c0_50] : memref<3x4xf32, #tpu.memory_space<smem>>
    %106 = vector.broadcast %105 : f32 to vector<2x128xf32>
    %107 = arith.addf %104, %106 : vector<2x128xf32>
    %cst_51 = arith.constant 0.000000e+00 : f32
    %108 = vector.broadcast %cst_51 : f32 to vector<2x128xf32>
    %109 = arith.cmpf oge, %107, %108 : vector<2x128xf32>
    %c2_52 = arith.constant 2 : index
    %c1_53 = arith.constant 1 : index
    %110 = memref.load %arg4[%c2_52, %c1_53] : memref<3x4xf32, #tpu.memory_space<smem>>
    %c2_54 = arith.constant 2 : index
    %c2_55 = arith.constant 2 : index
    %111 = memref.load %arg4[%c2_54, %c2_55] : memref<3x4xf32, #tpu.memory_space<smem>>
    %112 = vector.broadcast %110 : f32 to vector<2x128xf32>
    %113 = vector.broadcast %111 : f32 to vector<2x128xf32>
    %114 = arith.select %109, %112, %113 : vector<2x128xi1>, vector<2x128xf32>
    %115 = arith.mulf %107, %114 : vector<2x128xf32>
    %c2_56 = arith.constant 2 : index
    %c3_57 = arith.constant 3 : index
    %116 = memref.load %arg4[%c2_56, %c3_57] : memref<3x4xf32, #tpu.memory_space<smem>>
    %117 = vector.broadcast %116 : f32 to vector<2x128xf32>
    %118 = arith.addf %115, %117 : vector<2x128xf32>
    %c0_58 = arith.constant 0 : index
    %c2_59 = arith.constant 2 : index
    %c0_60 = arith.constant 0 : index
    %c0_61 = arith.constant 0 : index
    %119 = vector.load %arg5[%c0_58, %c2_59, %c0_60, %c0_61] : memref<1x3x2x128xf32, #tpu.memory_space<vmem>>, vector<1x1x2x128xf32>
    %120 = vector.shape_cast %119 : vector<1x1x2x128xf32> to vector<2x128xf32>
    %121 = vector.shape_cast %118 : vector<2x128xf32> to vector<1x1x2x128xf32>
    tpu.vector_store %arg5[%c0_58, %c2_59, %c0_60, %c0_61], %121 {strides = array<i32>} : memref<1x3x2x128xf32, #tpu.memory_space<vmem>>, vector<1x1x2x128xf32>,
    return
  }
  func.func @transform_0(%arg0: i32, %arg1: i32) -> (i32, i32, i32, i32) {
    %c0_i32 = arith.constant 0 : i32
    %c0_i32_0 = arith.constant 0 : i32
    %c0_i32_1 = arith.constant 0 : i32
    return %arg0, %c0_i32, %arg1, %c0_i32_0 : i32, i32, i32, i32
  }
  func.func @transform_1(%arg0: i32, %arg1: i32) -> (i32, i32) {
    %c0_i32 = arith.constant 0 : i32
    %c0_i32_0 = arith.constant 0 : i32
    %c0_i32_1 = arith.constant 0 : i32
    return %c0_i32, %c0_i32_0 : i32, i32
  }
  func.func @transform_2(%arg0: i32, %arg1: i32) -> (i32, i32) {
    %c0_i32 = arith.constant 0 : i32
    %c0_i32_0 = arith.constant 0 : i32
    %c0_i32_1 = arith.constant 0 : i32
    return %c0_i32, %c0_i32_0 : i32, i32
  }
  func.func @transform_3(%arg0: i32, %arg1: i32) -> (i32, i32, i32, i32) {
    %c0_i32 = arith.constant 0 : i32
    %c0_i32_0 = arith.constant 0 : i32
    %c0_i32_1 = arith.constant 0 : i32
    return %arg0, %c0_i32, %arg1, %c0_i32_0 : i32, i32, i32, i32
  }
}

</mosaic_0001>

<bundles_post_ra>
// kernel: out_conv_forward.3
= control target key start
LH: loop header
LB: loop body
LE: loop exit
PB: predicated region body
PF: predicated region fallthrough
CT: control target
= control target key end

     0   :  { %8 = vsyncpa [#allocation3], 0  ;;  %s710_s0 = inlined_call_operand.vmem [shape: f32[2,4,2,128], index: 0, kind: input, shape index: {}]   ;;  %s711_s1 = inlined_call_operand.vmem [shape: f32[3,4], index: 1, kind: input, shape index: {}]   ;;  %s712_s2 = inlined_call_operand.vmem [shape: f32[3,4], index: 2, kind: input, shape index: {}]   ;;  %s713_s3 = inlined_call_operand.vmem [shape: f32[2,3,2,128], index: 3, kind: output, shape index: {}]  }
   0x1   :  { %9 = vsyncpa [#allocation5], 0  ;;  %s597_s12 = smov 0   ;;  %s599_s13 = smov 0  }
   0x2   :  { %s601_s14 = smov 0  }
   0x3 LB: > { %s428_s15 = sadd.s32 4294967295, %s573_s14   ;;  %s27_s16 = sadd.s32 1, %s569_s13  ;;  %s573_s14 = sphi %s601_s14, %s15_s14   ;;  %s569_s13 = sphi %s599_s13, %s723_s13   ;;  %s565_s12 = sphi %s597_s12, %s722_s12  }
   0x4   : > { %p29_p0 = scmp.ge.s32.totalorder %s27_s16, 2  ;;  %p430_p1 = scmp.ge.s32.totalorder %s573_s14, 1 }
   0x5   : > { %p130_p2 = scmp.lt.s32.totalorder %s573_s14, 3  ;;  %p622_p4 = scmp.eq.s32.totalorder %s428_s15, 0 }
   0x6   : > { %s725_s16 = smov (%p29_p0, %s27_s16), 0  ;;  %s143_s21 = sshll.u32 %s711_s1, 4  ;;  %s144_s21 = int_to_ptr.vmem [resolvable:$true] %s143_s21 }
   0x7   : > { %p618_p3 = pnand %p430_p1, %p130_p2  ;;  %s154_s24 = sshll.u32 %s712_s2, 4  ;;  %s155_s24 = int_to_ptr.vmem [resolvable:$true] %s154_s24 }
   0x8   : > { %s718_s18 = scalar_select %p622_p4, 1, 0 }
   0x9   : > { %s717_s17 = scalar_select %p618_p3, 1, 0 }
   0xa   : > { %p476_p5 = pneg %p618_p3  ;;  %s513_s26 = scalar_lea.vmem %s144_s21, 64 }
   0xb   : > { %p514_p7 = scmp.ne.s32.totalorder %s144_s21, %s513_s26  ;;  %p521_p11 = scmp.lt.s32.totalorder %s144_s21, %s144_s21 }
   0xc   : > { %p636_p6 = pnand %p622_p4, %p476_p5  ;;  %p522_p12 = scmp.lt.s32.totalorder %s513_s26, %s513_s26 }
   0xe   : > { %p515_p8 = pneg %p636_p6  ;;  %p523_p13 = por %p522_p12, %p521_p11 }
  0x10   : > { %p516_p9 = pnand %p515_p8, %p514_p7 }
  0x12   : > { %p517_p10 = pneg %p516_p9 }
  0x14   : > { %p524_p0 = pnand %p523_p13, %p517_p10 }
  0x16   : > { %527 = shalt.err (!%p524_p0)
}
  0x17   : > { %s575_s27 = smov [#allocation2]   ;;  %s528_s28 = scalar_lea.vmem %s155_s24, 64 }
  0x18   : > { %479 = dma.vmem_to_smem (!%p636_p6), %s144_s21, 64, %s575_s27, [#allocation3]  }
  0x19   : > { %p529_p1 = scmp.ne.s32.totalorder %s155_s24, %s528_s28  ;;  %p536_p4 = scmp.lt.s32.totalorder %s155_s24, %s155_s24 }
  0x1a   : > { %p537_p3 = scmp.lt.s32.totalorder %s528_s28, %s528_s28 }
  0x1b   : > { %p531_p2 = pnand %p529_p1, %p515_p8 }
  0x1c   : > { %p538_p7 = por %p537_p3, %p536_p4 }
  0x1d   : > { %p532_p5 = pneg %p531_p2 }
  0x1f   : > { %p539_p9 = pnand %p538_p7, %p532_p5 }
  0x21   : > { %542 = shalt.err (!%p539_p9)
}
  0x22   : > { %s576_s29 = smov [#allocation4]   ;;  %p720_p10 = scmp.ne.s32.totalorder %s717_s17, 0 }
  0x23   : > { %482 = dma.vmem_to_smem (!%p636_p6), %s155_s24, 64, %s576_s29, [#allocation5]  }
  0x24   : > { %178 = sbr.rel (%p720_p10) target bundleno = 81 (0x51), region = 32  ;;  %p721_p11 = scmp.ne.s32.totalorder (!%p720_p10), %s718_s18, 0 }
  0x2b   : > { %556 = dma.done.wait (%p721_p11), [#allocation3], 64  }
  0x2c   : > { %558 = vsyncadd (%p721_p11), [#allocation3], 4294967232 }
  0x2d   : > { %560 = dma.done.wait (%p721_p11), [#allocation5], 64  }
  0x2e   : > { %562 = vsyncadd (%p721_p11), [#allocation5], 4294967232 }
  0x2f   : > { %188 = sfence }
  0x30   : > { %p213_p3 = scmp.lt.s32.totalorder %s565_s12, 1  ;;  %s233_s30 = sld [smem:[#allocation2]] }
  0x31   : > { %s440_s4 = sld [smem:[#allocation2 + $0x1]]  ;;  %s441_s5 = sld [smem:[#allocation2 + $0x2]] }
  0x32   : > { %s727_s12 = smov (!%p213_p3, %s565_s12), 1  ;;  %s442_s6 = sld [smem:[#allocation2 + $0x3]] }
  0x33   : > { %s466_s7 = sshll.u32 %s727_s12, 3  ;;  %s661_s8 = sld [smem:[#allocation4]] }
  0x34   : > { %s220_s11 = scalar_lea.vmem %s710_s0, %s466_s7  ;;  %s666_s15 = sld [smem:[#allocation4 + $0x1]] }
  0x35   : > { %v229_v0 = vld [vmem:[%s220_s11] sm:$0x3]  ;;  %v230_v1 = vld [vmem:[%s220_s11 + $0x2] sm:$0x3]  ;;  %v231_v2 = vld [vmem:[%s220_s11 + $0x4] sm:$0x3] }
  0x36   : > { %v234_v3 = vstv %s233_s30  ;;  %v232_v4 = vld [vmem:[%s220_s11 + $0x6] sm:$0x3]  ;;  %s668_s17 = sld [smem:[#allocation4 + $0x2]]  ;;  %s446_s18 = sld [smem:[#allocation2 + $0x80]] }
  0x37   : > { %v235_v5 = vmul.f32 %v234_v3, %v229_v0  ;;  %v237_v6 = vstv %s440_s4  ;;  %v241_v7 = vstv %s441_s5  ;;  %s447_s19 = sld [smem:[#allocation2 + $0x81]]  ;;  %s455_s20 = sld [smem:[#allocation2 + $0x100]] }
  0x38   : > { %v238_v8 = vmul.f32 %v237_v6, %v230_v1  ;;  %v242_v9 = vmul.f32 %v241_v7, %v231_v2  ;;  %v245_v10 = vstv %s442_s6  ;;  %s456_s21 = sld [smem:[#allocation2 + $0x101]]  ;;  %s448_s22 = sld [smem:[#allocation2 + $0x82]] }
  0x39   : > { %v246_v12 = vmul.f32 %v245_v10, %v232_v4  ;;  %s449_s23 = sld [smem:[#allocation2 + $0x83]]  ;;  %s672_s25 = sld [smem:[#allocation4 + $0x80]]  ;;  %v249_v14 = vstv %s661_s8 }
  0x3a   : > { %v239_v11 = vadd.f32 %v238_v8, %v235_v5  ;;  %s670_s24 = sld [smem:[#allocation4 + $0x3]]  ;;  %v254_v15 = vstv %s666_s15  ;;  %s676_s26 = sld [smem:[#allocation2 + $0x102]] }
  0x3b   : > { %s678_s27 = sld [smem:[#allocation2 + $0x103]]  ;;  %s681_s28 = sld [smem:[#allocation4 + $0x81]] }
  0x3c   : > { %v243_v13 = vadd.f32 %v242_v9, %v239_v11  ;;  %v255_v17 = vstv %s668_s17  ;;  %v263_v18 = vstv %s446_s18  ;;  %s683_s29 = sld [smem:[#allocation4 + $0x82]]  ;;  %s685_s30 = sld [smem:[#allocation4 + $0x100]] }
  0x3d   : > { %v266_v19 = vstv %s447_s19  ;;  %v264_v20 = vmul.f32 %v263_v18, %v229_v0  ;;  %v293_v22 = vstv %s455_s20  ;;  %s467_s4 = smul.u32 6, %s727_s12  ;;  %s688_s5 = sld [smem:[#allocation4 + $0x83]] }
  0x3e   : > { %v247_v16 = vadd.f32 %v246_v12, %v243_v13  ;;  %v267_v21 = vmul.f32 %v266_v19, %v230_v1  ;;  %v296_v23 = vstv %s456_s21  ;;  %v294_v25 = vmul.f32 %v293_v22, %v229_v0  ;;  %s460_s6 = sld [smem:[#allocation4 + $0x101]]  ;;  %s461_s7 = sld [smem:[#allocation4 + $0x102]] }
  0x3f   : > { %v297_v26 = vmul.f32 %v296_v23, %v230_v1  ;;  %v270_v27 = vstv %s448_s22  ;;  %v274_v30 = vstv %s449_s23  ;;  %v278_v37 = vstv %s672_s25  ;;  %s228_s9 = scalar_lea.vmem %s713_s3, %s467_s4  ;;  %s462_s10 = sld [smem:[#allocation4 + $0x103]] }
  0x40   : > { %v250_v24 = vadd.f32 %v249_v14, %v247_v16  ;;  %v268_v28 = vadd.f32 %v267_v21, %v264_v20  ;;  %v271_v29 = vmul.f32 %v270_v27, %v231_v2  ;;  %v275_v31 = vmul.f32 %v274_v30, %v232_v4 }
  0x41   : > { %v259_v33 = vstv %s670_s24  ;;  %v298_v35 = vadd.f32 %v297_v26, %v294_v25  ;;  %v300_v38 = vstv %s676_s26  ;;  %v304_v39 = vstv %s678_s27 }
  0x42   : > { %vm251_vm0 = vcmp.ge.f32.partialorder %v250_v24, 0.0  ;;  %v272_v34 = vadd.f32 %v271_v29, %v268_v28  ;;  %v301_v41 = vmul.f32 %v300_v38, %v231_v2  ;;  %v305_v42 = vmul.f32 %v304_v39, %v232_v4 }
  0x43   : > { %v256_v32 = vsel %vm251_vm0, %v254_v15, %v255_v17  ;;  %v283_v45 = vstv %s681_s28  ;;  %v284_v46 = vstv %s683_s29  ;;  %v308_v48 = vstv %s685_s30 }
  0x44   : > { %v257_v36 = vmul.f32 %v256_v32, %v250_v24  ;;  %v276_v40 = vadd.f32 %v275_v31, %v272_v34  ;;  %v302_v47 = vadd.f32 %v301_v41, %v298_v35  ;;  %v288_v51 = vstv %s688_s5 }
  0x45   : > { %v313_v54 = vstv %s460_s6  ;;  %v314_v55 = vstv %s461_s7  ;;  %v318_v58 = vstv %s462_s10 }
  0x46   : > { %v260_v43 = vadd.f32 %v259_v33, %v257_v36  ;;  %v279_v44 = vadd.f32 %v278_v37, %v276_v40  ;;  %v306_v49 = vadd.f32 %v305_v42, %v302_v47 }
  0x48   : > { %261 = vst [vmem:[%s228_s9] sm:$0x3] %v260_v43  ;;  %vm280_vm1 = vcmp.ge.f32.partialorder %v279_v44, 0.0  ;;  %v309_v53 = vadd.f32 %v308_v48, %v306_v49 }
  0x49   : > { %v285_v50 = vsel %vm280_vm1, %v283_v45, %v284_v46 }
  0x4a   : > { %v286_v52 = vmul.f32 %v285_v50, %v279_v44  ;;  %vm310_vm2 = vcmp.ge.f32.partialorder %v309_v53, 0.0 }
  0x4b   : > { %v315_v57 = vsel %vm310_vm2, %v313_v54, %v314_v55 }
  0x4c   : > { %v289_v56 = vadd.f32 %v288_v51, %v286_v52  ;;  %v316_v59 = vmul.f32 %v315_v57, %v309_v53 }
  0x4e   : > { %454 = vst [vmem:[%s228_s9 + $0x2] sm:$0x3] %v289_v56  ;;  %v319_v60 = vadd.f32 %v318_v58, %v316_v59 }
  0x50   : > { %463 = vst [vmem:[%s228_s9 + $0x4] sm:$0x3] %v319_v60 }
  0x51 PF: > { %s15_s14 = sadd.s32 1, %s573_s14   ;;  %s722_s12 = smov %s569_s13 }
  0x52   : > { %p12_p4 = scmp.ge.s32.totalorder %s15_s14, 4   ;;  %s723_s13 = smov %s725_s16 }
  0x54   :  { %14 = sbr.rel (!%p12_p4) target bundleno = 3 (0x3), region = 73 }
  0x5b   :  { %349 = vsyncpa [#allocation3], 1 }
  0x5c   :  { %351 = vsyncpa [#allocation3 + $0x1], 1 }
  0x5d   :  { %352 = vsyncpa [#allocation5], 1 }

// kernel: out_conv_forward.2
= control target key start
LH: loop header
LB: loop body
LE: loop exit
PB: predicated region body
PF: predicated region fallthrough
CT: control target
= control target key end

     0   :  { %7 = vsyncpa [#allocation3], 0  ;;  %s642_s9 = smov 0   ;;  %s644_s10 = smov 0   ;;  %s764_s0 = inlined_call_operand.vmem [shape: f32[2,4,2,128], index: 0, kind: input, shape index: {}]   ;;  %s765_s1 = inlined_call_operand.vmem [shape: f32[3,4], index: 1, kind: input, shape index: {}]   ;;  %s766_s2 = inlined_call_operand.vmem [shape: f32[2,3,4], index: 2, kind: output, shape index: {}]  }
   0x1   :  { %s646_s11 = smov 0  }
   0x2 LB: > { %s494_s12 = sadd.s32 4294967295, %s621_s11   ;;  %s25_s13 = sadd.s32 1, %s617_s10  ;;  %s621_s11 = sphi %s646_s11, %s13_s11   ;;  %s617_s10 = sphi %s644_s10, %s770_s10   ;;  %s613_s9 = sphi %s642_s9, %s769_s9  }
   0x3   : > { %p27_p0 = scmp.ge.s32.totalorder %s25_s13, 2  ;;  %p496_p1 = scmp.ge.s32.totalorder %s621_s11, 1 }
   0x4   : > { %p105_p2 = scmp.lt.s32.totalorder %s621_s11, 3  ;;  %p667_p4 = scmp.eq.s32.totalorder %s494_s12, 0 }
   0x5   : > { %s772_s13 = smov (%p27_p0, %s25_s13), 0  ;;  %s118_s18 = sshll.u32 %s765_s1, 4  ;;  %s119_s18 = int_to_ptr.vmem [resolvable:$true] %s118_s18 }
   0x6   : > { %p663_p3 = pnand %p496_p1, %p105_p2  ;;  %s580_s19 = scalar_lea.vmem %s119_s18, 64 }
   0x7   : > { %p581_p7 = scmp.ne.s32.totalorder %s119_s18, %s580_s19  ;;  %p588_p11 = scmp.lt.s32.totalorder %s119_s18, %s119_s18 }
   0x8   : > { %p546_p5 = pneg %p663_p3  ;;  %p589_p12 = scmp.lt.s32.totalorder %s580_s19, %s580_s19 }
   0xa   : > { %p547_p6 = pnand %p667_p4, %p546_p5  ;;  %p590_p13 = por %p589_p12, %p588_p11 }
   0xc   : > { %p582_p8 = pneg %p547_p6 }
   0xe   : > { %p583_p9 = pnand %p582_p8, %p581_p7 }
  0x10   : > { %p584_p10 = pneg %p583_p9 }
  0x12   : > { %p591_p0 = pnand %p590_p13, %p584_p10 }
  0x14   : > { %594 = shalt.err (!%p591_p0)
}
  0x15   : > { %s623_s20 = smov [#allocation2]   ;;  %142 = sbr.rel (%p663_p3) target bundleno = 305 (0x131), region = 28 }
  0x16   : > { %549 = dma.vmem_to_smem (!%p547_p6), %s119_s18, 64, %s623_s20, [#allocation3]  }
  0x1c   : > { %608 = dma.done.wait (%p667_p4), [#allocation3], 64  }
  0x1d   : > { %610 = vsyncadd (%p667_p4), [#allocation3], 4294967232 }
  0x1e   : > { %148 = sfence }
  0x1f   : > { %p167_p1 = scmp.lt.s32.totalorder %s613_s9, 1  ;;  %s193_s21 = sld [smem:[#allocation2]]  ;;  %vm209_vm0 = vcmask 1041408   ;;  %vm183_vm1 = vcmask 10240   ;;  %vm185_vm2 = vcmask 18448   ;;  %v624_v52 = vmov 0.0  }
  0x20   : > { %s504_s22 = sld [smem:[#allocation2 + $0x1]]  ;;  %s505_s23 = sld [smem:[#allocation2 + $0x2]]  ;;  %vm187_vm3 = vcmask 26648   ;;  %v625_v53 = vmov inf   ;;  %v626_v54 = vmov -inf   ;;  %vm222_vm4 = vcmask 0  }
  0x21   : > { %s774_s9 = smov (!%p167_p1, %s613_s9), 1  ;;  %s506_s24 = sld [smem:[#allocation2 + $0x3]]  ;;  %vm238_vm5 = vcmask 8200   ;;  %vm253_vm6 = vcmask 16400   ;;  %vm268_vm7 = vcmask 24600  }
  0x22   : > { %s507_s25 = sld [smem:[#allocation2 + $0x80]]  ;;  %s517_s26 = sshll.u32 %s774_s9, 3 }
  0x23   : > { %s174_s29 = scalar_lea.vmem %s764_s0, %s517_s26  ;;  %s508_s30 = sld [smem:[#allocation2 + $0x81]] }
  0x24   : > { %v189_v0 = vld [vmem:[%s174_s29] sm:$0x3]  ;;  %v190_v1 = vld [vmem:[%s174_s29 + $0x2] sm:$0x3]  ;;  %v191_v2 = vld [vmem:[%s174_s29 + $0x4] sm:$0x3] }
  0x25   : > { %v194_v3 = vstv %s193_s21  ;;  %v192_v4 = vld [vmem:[%s174_s29 + $0x6] sm:$0x3]  ;;  %s509_s3 = sld [smem:[#allocation2 + $0x82]]  ;;  %s510_s4 = sld [smem:[#allocation2 + $0x83]] }
  0x26   : > { %v195_v5 = vmul.f32 %v194_v3, %v189_v0  ;;  %v197_v6 = vstv %s504_s22  ;;  %v201_v7 = vstv %s505_s23  ;;  %s511_s5 = sld [smem:[#allocation2 + $0x100]]  ;;  %s512_s6 = sld [smem:[#allocation2 + $0x101]] }
  0x27   : > { %v198_v8 = vmul.f32 %v197_v6, %v190_v1  ;;  %v202_v9 = vmul.f32 %v201_v7, %v191_v2  ;;  %v205_v10 = vstv %s506_s24  ;;  %s513_s7 = sld [smem:[#allocation2 + $0x102]]  ;;  %s514_s8 = sld [smem:[#allocation2 + $0x103]] }
  0x28   : > { %v271_v11 = vstv %s507_s25  ;;  %v206_v13 = vmul.f32 %v205_v10, %v192_v4  ;;  %s503_s12 = sshll.u32 %s774_s9, 2 }
  0x29   : > { %v199_v12 = vadd.f32 %v198_v8, %v195_v5  ;;  %v272_v15 = vmul.f32 %v271_v11, %v189_v0  ;;  %v274_v16 = vstv %s508_s30  ;;  %s708_s16 = scalar_lea.vmem %s766_s2, %s503_s12 }
  0x2a   : > { %v275_v19 = vmul.f32 %v274_v16, %v190_v1  ;;  %184 = vst.msk [vmem:[%s708_s16] sm:$0x7] %vm183_vm1, %v624_v52 }
  0x2b   : > { %v203_v14 = vadd.f32 %v202_v9, %v199_v12  ;;  %v278_v17 = vstv %s509_s3  ;;  %v282_v21 = vstv %s510_s4  ;;  %186 = vst.msk [vmem:[%s708_s16] sm:$0x7] %vm185_vm2, %v625_v53 }
  0x2c   : > { %v279_v20 = vmul.f32 %v278_v17, %v191_v2  ;;  %v343_v22 = vstv %s511_s5  ;;  %v346_v23 = vstv %s512_s6  ;;  %v276_v27 = vadd.f32 %v275_v19, %v272_v15  ;;  %188 = vst.msk [vmem:[%s708_s16] sm:$0x7] %vm187_vm3, %v626_v54 }
  0x2d   : > { %v207_v18 = vadd.f32 %v206_v13, %v203_v14  ;;  %v350_v24 = vstv %s513_s7  ;;  %v283_v28 = vmul.f32 %v282_v21, %v192_v4  ;;  %v344_v29 = vmul.f32 %v343_v22, %v189_v0 }
  0x2e   : > { %v347_v30 = vmul.f32 %v346_v23, %v190_v1  ;;  %v354_v31 = vstv %s514_s8  ;;  %v280_v33 = vadd.f32 %v279_v20, %v276_v27  ;;  %v351_v34 = vmul.f32 %v350_v24, %v191_v2 }
  0x2f   : > { %v241_v25 = vsel %vm209_vm0, %v207_v18, inf  ;;  %v210_v26 = vsel %vm209_vm0, %v207_v18, 0.0  ;;  %v256_v32 = vsel %vm209_vm0, %v207_v18, -inf  ;;  %v355_v37 = vmul.f32 %v354_v31, %v192_v4 }
  0x30   : > { %242 = vmin.xlane.f32.xlu1 %v241_v25  ;;  %211 = vadd.xlane.f32.xlu0 %v210_v26  ;;  %v348_v35 = vadd.f32 %v347_v30, %v344_v29  ;;  %v284_v36 = vadd.f32 %v283_v28, %v280_v33  ;;  %v225_v43 = vmul.f32 %v207_v18, %v207_v18 }
  0x32   : > { %v352_v38 = vadd.f32 %v351_v34, %v348_v35  ;;  %v286_v39 = vsel %vm209_vm0, %v284_v36, 0.0  ;;  %v300_v40 = vmul.f32 %v284_v36, %v284_v36  ;;  %v315_v42 = vsel %vm209_vm0, %v284_v36, inf }
  0x33   : > { %v329_v45 = vsel %vm209_vm0, %v284_v36, -inf  ;;  %v226_v47 = vsel %vm209_vm0, %v225_v43, 0.0 }
  0x34   : > { %257 = vmax.xlane.f32.xlu1 %v256_v32  ;;  %287 = vadd.xlane.f32.xlu0 %v286_v39  ;;  %v301_v41 = vsel %vm209_vm0, %v300_v40, 0.0  ;;  %v356_v44 = vadd.f32 %v355_v37, %v352_v38 }
  0x36   : > { %v372_v46 = vmul.f32 %v356_v44, %v356_v44  ;;  %v358_v49 = vsel %vm209_vm0, %v356_v44, 0.0  ;;  %v401_v50 = vsel %vm209_vm0, %v356_v44, -inf  ;;  %v387_v51 = vsel %vm209_vm0, %v356_v44, inf }
  0x38   : > { %302 = vadd.xlane.f32.xlu1 %v301_v41  ;;  %316 = vmin.xlane.f32.xlu0 %v315_v42  ;;  %v373_v48 = vsel %vm209_vm0, %v372_v46, 0.0 }
  0x3c   : > { %330 = vmax.xlane.f32.xlu1 %v329_v45  ;;  %227 = vadd.xlane.f32.xlu0 %v226_v47 }
  0x40   : > { %374 = vadd.xlane.f32.xlu1 %v373_v48  ;;  %359 = vadd.xlane.f32.xlu0 %v358_v49 }
  0x44   : > { %402 = vmax.xlane.f32.xlu1 %v401_v50  ;;  %388 = vmin.xlane.f32.xlu0 %v387_v51 }
  0xbd   : > { %v243_v55 = vpop.xlane.xlu1 %242  ;;  %v212_v56 = vpop.xlane.xlu0 %211 }
  0xbe   : > { %v213_v57 = vrot.slane %v212_v56, 4  ;;  %v244_v61 = vrot.slane %v243_v55, 4 }
  0xc0   : > { %v214_v58 = vadd.f32 %v213_v57, %v212_v56  ;;  %v245_v5 = vmin.f32 %v243_v55, %v244_v61 }
  0xc1   : > { %v258_v59 = vpop.xlane.xlu1 %257  ;;  %v288_v62 = vpop.xlane.xlu0 %287 }
  0xc2   : > { %v215_v60 = vrot.slane %v214_v58, 2  ;;  %v259_v63 = vrot.slane %v258_v59, 4  ;;  %v289_v1 = vrot.slane %v288_v62, 4  ;;  %v246_v14 = vrot.slane %v245_v5, 2 }
  0xc4   : > { %v216_v0 = vadd.f32 %v215_v60, %v214_v58  ;;  %v260_v7 = vmax.f32 %v258_v59, %v259_v63  ;;  %v290_v10 = vadd.f32 %v289_v1, %v288_v62  ;;  %v247_v28 = vmin.f32 %v245_v5, %v246_v14 }
  0xc5   : > { %v303_v2 = vpop.xlane.xlu1 %302  ;;  %v317_v6 = vpop.xlane.xlu0 %316 }
  0xc6   : > { %v304_v3 = vrot.slane %v303_v2, 4  ;;  %v217_v4 = vrot.slane %v216_v0, 1  ;;  %v318_v8 = vrot.slane %v317_v6, 4  ;;  %v261_v17 = vrot.slane %v260_v7, 2 }
  0xc7   : > { %v291_v20 = vrot.slane %v290_v10, 2  ;;  %v248_v40 = vrot.slane %v247_v28, 1 }
  0xc8   : > { %v218_v9 = vadd.f32 %v217_v4, %v216_v0  ;;  %v305_v11 = vadd.f32 %v304_v3, %v303_v2  ;;  %v319_v15 = vmin.f32 %v317_v6, %v318_v8  ;;  %v262_v32 = vmax.f32 %v260_v7, %v261_v17  ;;  %v285_v17 = vld [vmem:[%s708_s16 + $0x1] sm:$0x1] }
  0xc9   : > { %v331_v12 = vpop.xlane.xlu1 %330  ;;  %v228_v16 = vpop.xlane.xlu0 %227  ;;  %v292_v33 = vadd.f32 %v291_v20, %v290_v10  ;;  %v249_v56 = vmin.f32 %v247_v28, %v248_v40  ;;  %v357_v20 = vld [vmem:[%s708_s16 + $0x2] sm:$0x1] }
  0xca   : > { %v332_v13 = vrot.slane %v331_v12, 4  ;;  %518 = vpush %v218_v9  ;;  %v229_v19 = vrot.slane %v228_v16, 4  ;;  %v306_v21 = vrot.slane %v305_v11, 2  ;;  %v320_v26 = vrot.slane %v319_v15, 2 }
  0xcb   : > { %v263_v46 = vrot.slane %v262_v32, 1  ;;  %v293_v48 = vrot.slane %v292_v33, 1 }
  0xcc   : > { %v333_v18 = vmax.f32 %v331_v12, %v332_v13  ;;  %v230_v24 = vadd.f32 %v229_v19, %v228_v16  ;;  %v307_v34 = vadd.f32 %v306_v21, %v305_v11  ;;  %v321_v41 = vmin.f32 %v319_v15, %v320_v26  ;;  %v208_v11 = vld [vmem:[%s708_s16] sm:$0x1] }
  0xcd   : > { %v375_v22 = vpop.xlane.xlu1 %374  ;;  %v360_v27 = vpop.xlane.xlu0 %359  ;;  %v264_v59 = vmax.f32 %v262_v32, %v263_v46  ;;  %v294_v63 = vadd.f32 %v293_v48, %v292_v33 }
  0xce   : > { %v334_v23 = vrot.slane %v333_v18, 2  ;;  %v376_v25 = vrot.slane %v375_v22, 4  ;;  %v231_v29 = vrot.slane %v230_v24, 2  ;;  %v361_v30 = vrot.slane %v360_v27, 4 }
  0xcf   : > { %v308_v49 = vrot.slane %v307_v34, 1  ;;  %v322_v57 = vrot.slane %v321_v41, 1 }
  0xd0   : > { %v377_v31 = vadd.f32 %v376_v25, %v375_v22  ;;  %v362_v36 = vadd.f32 %v361_v30, %v360_v27  ;;  %v232_v38 = vadd.f32 %v231_v29, %v230_v24  ;;  %v335_v39 = vmax.f32 %v333_v18, %v334_v23 }
  0xd1   : > { %v403_v35 = vpop.xlane.xlu1 %402  ;;  %v389_v42 = vpop.xlane.xlu0 %388  ;;  %v309_v1 = vadd.f32 %v308_v49, %v307_v34  ;;  %v323_v4 = vmin.f32 %v321_v41, %v322_v57 }
  0xd2   : > { %v378_v37 = vrot.slane %v377_v31, 2  ;;  %v404_v43 = vrot.slane %v403_v35, 4  ;;  %v363_v44 = vrot.slane %v362_v36, 2  ;;  %v233_v45 = vrot.slane %v232_v38, 1 }
  0xd3   : > { %v390_v47 = vrot.slane %v389_v42, 4  ;;  %v336_v53 = vrot.slane %v335_v39, 1 }
  0xd4   : > { %v379_v50 = vadd.f32 %v378_v37, %v377_v31  ;;  %v405_v51 = vmax.f32 %v403_v35, %v404_v43  ;;  %v234_v52 = vadd.f32 %v233_v45, %v232_v38  ;;  %v364_v54 = vadd.f32 %v363_v44, %v362_v36 }
  0xd5   : > { %v391_v55 = vmin.f32 %v389_v42, %v390_v47  ;;  %v337_v2 = vmax.f32 %v335_v39, %v336_v53 }
  0xd6   : > { %v406_v58 = vrot.slane %v405_v51, 2  ;;  %520 = vpush %v234_v52  ;;  %v365_v60 = vrot.slane %v364_v54, 1  ;;  %v380_v62 = vrot.slane %v379_v50, 1 }
  0xd7   : > { %v392_v61 = vrot.slane %v391_v55, 2  ;;  %522 = vpush %v249_v56 }
  0xd8   : > { %v407_v0 = vmax.f32 %v405_v51, %v406_v58  ;;  %524 = vpush %v264_v59  ;;  %v366_v5 = vadd.f32 %v365_v60, %v364_v54  ;;  %v381_v7 = vadd.f32 %v380_v62, %v379_v50 }
  0xd9   : > { %v393_v3 = vmin.f32 %v391_v55, %v392_v61  ;;  %526 = vpush %v294_v63 }
  0xda   : > { %v408_v6 = vrot.slane %v407_v0, 1  ;;  %528 = vpush %v309_v1 }
  0xdb   : > { %v394_v8 = vrot.slane %v393_v3, 1  ;;  %530 = vpush %v323_v4 }
  0xdc   : > { %532 = vpush %v337_v2  ;;  %v409_v10 = vmax.f32 %v407_v0, %v408_v6 }
  0xdd   : > { %v395_v9 = vmin.f32 %v393_v3, %v394_v8  ;;  %534 = vpush %v366_v5 }
  0xde   : > { %536 = vpush %v381_v7 }
  0xdf   : > { %538 = vpush %v395_v9 }
  0xe0   : > { %540 = vpush %v409_v10 }
  0xfb   : > { %s519_s9 = spop %518 }
  0xfc   : > { %v220_v12 = vstv %s519_s9 }
  0xfd   : > { %v221_v13 = vadd.f32 %v220_v12, %v208_v11 }
  0xff   : > { %223 = vst.msk [vmem:[%s708_s16] sm:$0x1] %vm222_vm4, %v221_v13 }
 0x106   : > { %v224_v14 = vld [vmem:[%s708_s16] sm:$0x1] }
 0x107   : > { %s521_s17 = spop %520 }
 0x108   : > { %v236_v15 = vstv %s521_s17  ;;  %s523_s18 = spop %522 }
 0x109   : > { %v237_v16 = vadd.f32 %v236_v15, %v224_v14  ;;  %s717_s19 = spop %524  ;;  %v251_v24 = vstv %s523_s18 }
 0x10a   : > { %s527_s20 = spop %526  ;;  %v266_v33 = vstv %s717_s19 }
 0x10b   : > { %239 = vst.msk [vmem:[%s708_s16] sm:$0x1] %vm238_vm5, %v237_v16  ;;  %v296_v18 = vstv %s527_s20  ;;  %s529_s21 = spop %528 }
 0x10c   : > { %v297_v19 = vadd.f32 %v296_v18, %v285_v17  ;;  %s531_s22 = spop %530  ;;  %v311_v27 = vstv %s529_s21 }
 0x10d   : > { %s722_s23 = spop %532  ;;  %v325_v36 = vstv %s531_s22 }
 0x10e   : > { %298 = vst.msk [vmem:[%s708_s16 + $0x1] sm:$0x1] %vm222_vm4, %v297_v19  ;;  %s535_s24 = spop %534  ;;  %v339_v42 = vstv %s722_s23 }
 0x10f   : > { %v368_v21 = vstv %s535_s24  ;;  %s537_s25 = spop %536 }
 0x110   : > { %v369_v22 = vadd.f32 %v368_v21, %v357_v20  ;;  %v383_v30 = vstv %s537_s25  ;;  %s539_s26 = spop %538 }
 0x111   : > { %v397_v39 = vstv %s539_s26  ;;  %s541_s27 = spop %540 }
 0x112   : > { %v240_v23 = vld [vmem:[%s708_s16] sm:$0x1]  ;;  %370 = vst.msk [vmem:[%s708_s16 + $0x2] sm:$0x1] %vm222_vm4, %v369_v22  ;;  %v411_v45 = vstv %s541_s27 }
 0x113   : > { %v252_v25 = vmin.f32 %v240_v23, %v251_v24 }
 0x115   : > { %254 = vst.msk [vmem:[%s708_s16] sm:$0x1] %vm253_vm6, %v252_v25  ;;  %v299_v26 = vld [vmem:[%s708_s16 + $0x1] sm:$0x1] }
 0x116   : > { %v312_v28 = vadd.f32 %v311_v27, %v299_v26 }
 0x118   : > { %313 = vst.msk [vmem:[%s708_s16 + $0x1] sm:$0x1] %vm238_vm5, %v312_v28 }
 0x119   : > { %v371_v29 = vld [vmem:[%s708_s16 + $0x2] sm:$0x1] }
 0x11a   : > { %v384_v31 = vadd.f32 %v383_v30, %v371_v29 }
 0x11c   : > { %v255_v32 = vld [vmem:[%s708_s16] sm:$0x1]  ;;  %385 = vst.msk [vmem:[%s708_s16 + $0x2] sm:$0x1] %vm238_vm5, %v384_v31 }
 0x11d   : > { %v267_v34 = vmax.f32 %v255_v32, %v266_v33 }
 0x11f   : > { %269 = vst.msk [vmem:[%s708_s16] sm:$0x1] %vm268_vm7, %v267_v34  ;;  %v314_v35 = vld [vmem:[%s708_s16 + $0x1] sm:$0x1] }
 0x120   : > { %v326_v37 = vmin.f32 %v314_v35, %v325_v36 }
 0x122   : > { %327 = vst.msk [vmem:[%s708_s16 + $0x1] sm:$0x1] %vm253_vm6, %v326_v37 }
 0x123   : > { %v386_v38 = vld [vmem:[%s708_s16 + $0x2] sm:$0x1] }
 0x124   : > { %v398_v40 = vmin.f32 %v386_v38, %v397_v39 }
 0x126   : > { %399 = vst.msk [vmem:[%s708_s16 + $0x2] sm:$0x1] %vm253_vm6, %v398_v40 }
 0x129   : > { %v328_v41 = vld [vmem:[%s708_s16 + $0x1] sm:$0x1] }
 0x12a   : > { %v340_v43 = vmax.f32 %v328_v41, %v339_v42 }
 0x12c   : > { %341 = vst.msk [vmem:[%s708_s16 + $0x1] sm:$0x1] %vm268_vm7, %v340_v43 }
 0x12d   : > { %v400_v44 = vld [vmem:[%s708_s16 + $0x2] sm:$0x1] }
 0x12e   : > { %v412_v46 = vmax.f32 %v400_v44, %v411_v45 }
 0x130   : > { %413 = vst.msk [vmem:[%s708_s16 + $0x2] sm:$0x1] %vm268_vm7, %v412_v46 }
 0x131 PF: > { %s13_s11 = sadd.s32 1, %s621_s11   ;;  %s769_s9 = smov %s617_s10 }
 0x132   : > { %p10_p2 = scmp.ge.s32.totalorder %s13_s11, 4   ;;  %s770_s10 = smov %s772_s13 }
 0x134   :  { %12 = sbr.rel (!%p10_p2) target bundleno = 2 (0x2), region = 67 }
 0x13b   :  { %433 = vsyncpa [#allocation3], 1 }
 0x13c   :  { %435 = vsyncpa [#allocation3 + $0x1], 1 }

</bundles_post_ra>
